<compile_context>
chip_gen: v6e
topology: v6e:2x2x1
jax: 0.10.0
libtpu: 0.0.40
codegen_flags: <defaults>
</compile_context>

<pallas_src>
import math

import jax
import jax.numpy as jnp
from jax.experimental import pallas as pl
from jax.experimental.pallas import tpu as pltpu


def spectral_attention_kernel(x_ref, wbd_ref, wx_ref, wh_ref, b_ref, watt_ref,
                              out_ref):
    """One batch tile of SpectralAttention.

    x_ref:    (TB, S*FC) f32  all S score slabs for TB batches (lane-dense)
    wbd_ref:  (FC, FC)   cd   block-diag(W_spectral), one block per feature
    wx_ref:   (FC, C)    cd   x-half of the channel-MLP Linear
    wh_ref:   (FC, C)    cd   H-half of the channel-MLP Linear
    b_ref:    (1, C)     f32  Linear bias
    watt_ref: (1, C)     f32  attention vector
    out_ref:  (TB, S)    f32  softmax attention weights
    """
    FC = wbd_ref.shape[0]
    S = out_ref.shape[1]
    cd = wbd_ref.dtype                       # matmul compute dtype (f32/bf16)

    # ---- mean over the S score slabs (free FC-aligned lane slices, f32 VPU).
    # The mean commutes with the spectral matmul, so it is hoisted in front of
    # it (one (TB,FC)@(FC,FC) matmul per batch tile instead of S of them).
    xsum = x_ref[:, 0:FC].astype(jnp.float32)
    for s in range(1, S):
        xsum = xsum + x_ref[:, s * FC:(s + 1) * FC].astype(jnp.float32)
    xmean = xsum * (1.0 / S)                                   # (TB, FC) f32

    # ---- compute_H_sp: relu(mean_s(x) @ W_spectral); spectral matmul folded
    # as a block-diagonal (FC, FC) weight -> no (TB,FC)<->(TB*F,C) relayouts.
    h = jnp.dot(xmean.astype(cd), wbd_ref[...],
                preferred_element_type=jnp.float32)            # (TB, FC) f32
    h = jnp.maximum(h, 0.0)                                    # ReLU (f32)

    # ---- H-half of the fused channel-MLP Linear + bias (shared by all scores)
    th = jnp.dot(h.astype(cd), wh_ref[...],
                 preferred_element_type=jnp.float32) + b_ref[...]   # (TB, C)

    watt = watt_ref[...]                                       # (1, C) f32

    # ---- per-score x-half of the Linear, tanh, attention dot product.
    # NOTE: C=32 < 128 lanes, so the tanh/mul/lane-reduce below run at 25%
    # lane occupancy; with no VMEM scratch round-trips this is a tiny fraction
    # of the tile's work and stays hidden under the slab DMA on v5e/v6e/v7x.
    scores = []
    for s in range(S):
        xs = x_ref[:, s * FC:(s + 1) * FC].astype(cd)          # (TB, FC)
        tx = jnp.dot(xs, wx_ref[...],
                     preferred_element_type=jnp.float32)       # (TB, C) f32
        z = jnp.tanh(tx + th)                                  # (TB, C) f32
        scores.append(jnp.sum(z * watt, axis=-1, keepdims=True))   # (TB, 1)

    # ---- softmax over the S scores.  EXACT reciprocal: the approx EUP
    # reciprocal's ~2^-12 error breaks the "rows sum to 1" invariant.
    m = scores[0]
    for s in range(1, S):
        m = jnp.maximum(m, scores[s])
    exps = [jnp.exp(sc - m) for sc in scores]
    denom = exps[0]
    for s in range(1, S):
        denom = denom + exps[s]
    inv = 1.0 / denom                                          # (TB, 1) f32

    # Padded rows of a partial trailing batch tile may hold unspecified data;
    # every op above is row-local (matmuls, tanh, per-row softmax), so garbage
    # cannot leak into valid rows, and the store below is clipped to B.
    for s in range(S):
        out_ref[:, s:s + 1] = exps[s] * inv


def _round_up(n, m):
    return ((n + m - 1) // m) * m


def spectral_attention(x, w_spectral, w_attention, lin_w, lin_b, *,
                       tb=256, compute_dtype=jnp.float32):
    """SpectralAttention forward.  x: (B, S=9, F, C) f32 -> (B, S) softmax."""
    B, S, F, C = x.shape
    FC = F * C

    if tb <= 0 or tb % 128 != 0:
        raise ValueError("tb must be a positive multiple of 128")

    # Batch tile: one block for small B; otherwise a multiple of 128 capped so
    # nb >= 2 (the 'parallel' batch axis then lands on both v7x TensorCores).
    if B < 256:
        TB = B
    else:
        TB = min(tb, _round_up(pl.cdiv(B, 2), 128))
    nb = pl.cdiv(B, TB)

    # ---- weight prep (tiny, wrapper-side) ----------------------------------
    # Block-diagonal spectral weight: applies W_spectral to every C-sized
    # feature block of the flattened (F*C,) axis.
    w_bd = jnp.kron(jnp.eye(F, dtype=jnp.float32),
                    w_spectral.astype(jnp.float32)).astype(compute_dtype)
    # Split the Linear weight (PyTorch layout (out=C, in=2*F*C)) into the
    # H-part and x-part matching the interleaved cat/flatten order.
    wT = jnp.transpose(lin_w).reshape(F, 2, C, C)   # (F, [H|x], C_in, C_out)
    w_h = wT[:, 0].reshape(FC, C).astype(compute_dtype)
    w_x = wT[:, 1].reshape(FC, C).astype(compute_dtype)
    bias = lin_b.reshape(1, C).astype(jnp.float32)
    watt = w_attention.reshape(1, C).astype(jnp.float32)

    # Lane-dense input layout: (B, S*F*C).  Pure reshape, NO dtype cast (that
    # would be an extra HBM read+write pass); casting happens in-kernel.
    x2 = x.reshape(B, S * FC)

    return pl.pallas_call(
        spectral_attention_kernel,
        out_shape=jax.ShapeDtypeStruct((B, S), jnp.float32),
        grid_spec=pltpu.PrefetchScalarGridSpec(
            num_scalar_prefetch=0,
            grid=(nb,),
            in_specs=[
                pl.BlockSpec((TB, S * FC), lambda b: (b, 0)),  # x slab
                pl.BlockSpec((FC, FC), lambda b: (0, 0)),      # block-diag W_sp
                pl.BlockSpec((FC, C),  lambda b: (0, 0)),      # W_x
                pl.BlockSpec((FC, C),  lambda b: (0, 0)),      # W_h
                pl.BlockSpec((1, C),   lambda b: (0, 0)),      # bias
                pl.BlockSpec((1, C),   lambda b: (0, 0)),      # w_attention
            ],
            out_specs=pl.BlockSpec((TB, S), lambda b: (b, 0)),
        ),
        compiler_params=pltpu.CompilerParams(
            dimension_semantics=("parallel",),
            vmem_limit_bytes=32 * 1024 * 1024),
    )(x2, w_bd, w_x, w_h, bias, watt)


def reference(x, w_spectral, w_attention, lin_w, lin_b):
    """Pure-JAX reference mirroring the PyTorch forward exactly."""
    B, S, F, C = x.shape
    h = jax.nn.relu(jnp.mean(jnp.einsum('bsfc,cd->bsfd', x, w_spectral), axis=1))
    hexp = jnp.broadcast_to(h[:, None], (B, S, F, C))
    cat = jnp.concatenate([hexp, x], axis=3).reshape(B, S, -1)
    lin = jnp.einsum('bsi,oi->bso', cat, lin_w) + lin_b
    z = jnp.tanh(lin)
    scores = jnp.einsum('bsc,c->bs', z, w_attention)
    return jax.nn.softmax(scores, axis=1)


if __name__ == "__main__":
    # Shapes consistent with the module: (B, num_scores=9, feat_dim, in_feat)
    S, F, C = 9, 16, 32

    key = jax.random.PRNGKey(0)
    kx, k1, k2, k3, k4, kx2 = jax.random.split(key, 6)

    # Deterministic parameter init (mirrors the PyTorch init recipe).
    stdv = 1.0 / math.sqrt(C)
    w_spectral = jax.random.uniform(k1, (C, C), jnp.float32, -stdv, stdv)
    w_attention = jax.random.uniform(k2, (C,), jnp.float32, -stdv, stdv)
    lin_in = C * 2 * F
    lin_bound = 1.0 / math.sqrt(lin_in)
    lin_w = jax.random.uniform(k3, (C, lin_in), jnp.float32, -lin_bound, lin_bound)
    lin_b = jax.random.uniform(k4, (C,), jnp.float32, -lin_bound, lin_bound)

    # --- small-shape check (B=2), single batch tile -------------------------
    B = 2
    x = jax.random.normal(kx, (B, S, F, C), dtype=jnp.float32)
    out = jax.block_until_ready(
        spectral_attention(x, w_spectral, w_attention, lin_w, lin_b))
    ref = reference(x, w_spectral, w_attention, lin_w, lin_b)
    assert out.shape == (B, S)
    assert jnp.allclose(out, ref, rtol=3e-3, atol=3e-4)
    assert jnp.allclose(jnp.sum(out, axis=1), 1.0, atol=1e-5)

    # --- batched check (B=260): nb=2 (both v7x TCs) + partial trailing tile --
    B2 = 260
    xb = jax.random.normal(kx2, (B2, S, F, C), dtype=jnp.float32)
    out2 = jax.block_until_ready(
        spectral_attention(xb, w_spectral, w_attention, lin_w, lin_b))
    ref2 = reference(xb, w_spectral, w_attention, lin_w, lin_b)
    assert out2.shape == (B2, S)
    assert jnp.allclose(out2, ref2, rtol=3e-3, atol=3e-4)
    assert jnp.allclose(jnp.sum(out2, axis=1), 1.0, atol=1e-5)

    # --- bf16 MXU path: operands cast in-kernel, f32 accumulation ------------
    out3 = jax.block_until_ready(
        spectral_attention(xb, w_spectral, w_attention, lin_w, lin_b,
                           compute_dtype=jnp.bfloat16))
    assert jnp.allclose(out3, ref2, rtol=5e-2, atol=5e-3)
    assert jnp.allclose(jnp.sum(out3, axis=1), 1.0, atol=1e-4)

    print("KERNEL_OK")
</pallas_src>

<mosaic_0001>
module attributes {stable_mosaic.version = 11 : i64} {
  func.func @spectral_attention_kernel(%arg0: i32, %arg1: memref<2x4608xf32, #tpu.memory_space<vmem>>, %arg2: memref<512x512xf32, #tpu.memory_space<vmem>>, %arg3: memref<512x32xf32, #tpu.memory_space<vmem>>, %arg4: memref<512x32xf32, #tpu.memory_space<vmem>>, %arg5: memref<1x32xf32, #tpu.memory_space<vmem>>, %arg6: memref<1x32xf32, #tpu.memory_space<vmem>>, %arg7: memref<2x9xf32, #tpu.memory_space<vmem>>) attributes {dimension_semantics = [#tpu.dimension_semantics<parallel>], iteration_bounds = array<i64: 1>, scalar_prefetch = 0 : i64, scratch_operands = 0 : i64, tpu.core_type = #tpu.core_type<tc>, window_params = [{transform_indices = @transform_0, window_bounds = array<i64: 2, 4608>}, {pipeline_mode = #tpu.pipeline_mode<synchronous>, transform_indices = @transform_1, window_bounds = array<i64: 512, 512>}, {pipeline_mode = #tpu.pipeline_mode<synchronous>, transform_indices = @transform_2, window_bounds = array<i64: 512, 32>}, {pipeline_mode = #tpu.pipeline_mode<synchronous>, transform_indices = @transform_3, window_bounds = array<i64: 512, 32>}, {pipeline_mode = #tpu.pipeline_mode<synchronous>, transform_indices = @transform_4, window_bounds = array<i64: 1, 32>}, {pipeline_mode = #tpu.pipeline_mode<synchronous>, transform_indices = @transform_5, window_bounds = array<i64: 1, 32>}, {transform_indices = @transform_6, window_bounds = array<i64: 2, 9>}]} {
    %c0 = arith.constant 0 : index
    %c0_0 = arith.constant 0 : index
    %0 = vector.load %arg1[%c0, %c0_0] : memref<2x4608xf32, #tpu.memory_space<vmem>>, vector<2x512xf32>
    %c0_1 = arith.constant 0 : index
    %c512 = arith.constant 512 : index
    %1 = vector.load %arg1[%c0_1, %c512] : memref<2x4608xf32, #tpu.memory_space<vmem>>, vector<2x512xf32>
    %2 = arith.addf %0, %1 : vector<2x512xf32>
    %c0_2 = arith.constant 0 : index
    %c1024 = arith.constant 1024 : index
    %3 = vector.load %arg1[%c0_2, %c1024] : memref<2x4608xf32, #tpu.memory_space<vmem>>, vector<2x512xf32>
    %4 = arith.addf %2, %3 : vector<2x512xf32>
    %c0_3 = arith.constant 0 : index
    %c1536 = arith.constant 1536 : index
    %5 = vector.load %arg1[%c0_3, %c1536] : memref<2x4608xf32, #tpu.memory_space<vmem>>, vector<2x512xf32>
    %6 = arith.addf %4, %5 : vector<2x512xf32>
    %c0_4 = arith.constant 0 : index
    %c2048 = arith.constant 2048 : index
    %7 = vector.load %arg1[%c0_4, %c2048] : memref<2x4608xf32, #tpu.memory_space<vmem>>, vector<2x512xf32>
    %8 = arith.addf %6, %7 : vector<2x512xf32>
    %c0_5 = arith.constant 0 : index
    %c2560 = arith.constant 2560 : index
    %9 = vector.load %arg1[%c0_5, %c2560] : memref<2x4608xf32, #tpu.memory_space<vmem>>, vector<2x512xf32>
    %10 = arith.addf %8, %9 : vector<2x512xf32>
    %c0_6 = arith.constant 0 : index
    %c3072 = arith.constant 3072 : index
    %11 = vector.load %arg1[%c0_6, %c3072] : memref<2x4608xf32, #tpu.memory_space<vmem>>, vector<2x512xf32>
    %12 = arith.addf %10, %11 : vector<2x512xf32>
    %c0_7 = arith.constant 0 : index
    %c3584 = arith.constant 3584 : index
    %13 = vector.load %arg1[%c0_7, %c3584] : memref<2x4608xf32, #tpu.memory_space<vmem>>, vector<2x512xf32>
    %14 = arith.addf %12, %13 : vector<2x512xf32>
    %c0_8 = arith.constant 0 : index
    %c4096 = arith.constant 4096 : index
    %15 = vector.load %arg1[%c0_8, %c4096] : memref<2x4608xf32, #tpu.memory_space<vmem>>, vector<2x512xf32>
    %16 = arith.addf %14, %15 : vector<2x512xf32>
    %cst = arith.constant 0.111111112 : f32
    %17 = vector.broadcast %cst : f32 to vector<2x512xf32>
    %18 = arith.mulf %16, %17 : vector<2x512xf32>
    %c0_9 = arith.constant 0 : index
    %c0_10 = arith.constant 0 : index
    %19 = vector.load %arg2[%c0_9, %c0_10] : memref<512x512xf32, #tpu.memory_space<vmem>>, vector<512x512xf32>
    %cst_11 = arith.constant dense<0.000000e+00> : vector<2x512xf32>
    %20 = tpu.matmul %18, %19, %cst_11 {dimension_numbers = #tpu.dot_dimension_numbers<[1], [0], [0], [1], [0, 0, 1, 1], [], []>} : vector<2x512xf32>, vector<512x512xf32>, vector<2x512xf32> -> vector<2x512xf32>
    %cst_12 = arith.constant 0.000000e+00 : f32
    %21 = vector.broadcast %cst_12 : f32 to vector<2x512xf32>
    %22 = arith.maximumf %20, %21 : vector<2x512xf32>
    %c0_13 = arith.constant 0 : index
    %c0_14 = arith.constant 0 : index
    %23 = vector.load %arg4[%c0_13, %c0_14] : memref<512x32xf32, #tpu.memory_space<vmem>>, vector<512x32xf32>
    %cst_15 = arith.constant dense<0.000000e+00> : vector<2x32xf32>
    %24 = tpu.matmul %22, %23, %cst_15 {dimension_numbers = #tpu.dot_dimension_numbers<[1], [0], [0], [1], [0, 0, 1, 1], [], []>} : vector<2x512xf32>, vector<512x32xf32>, vector<2x32xf32> -> vector<2x32xf32>
    %c0_16 = arith.constant 0 : index
    %c0_17 = arith.constant 0 : index
    %25 = vector.load %arg5[%c0_16, %c0_17] : memref<1x32xf32, #tpu.memory_space<vmem>>, vector<1x32xf32>
    %26 = vector.broadcast %25 : vector<1x32xf32> to vector<2x32xf32>
    %27 = arith.addf %24, %26 : vector<2x32xf32>
    %c0_18 = arith.constant 0 : index
    %c0_19 = arith.constant 0 : index
    %28 = vector.load %arg6[%c0_18, %c0_19] : memref<1x32xf32, #tpu.memory_space<vmem>>, vector<1x32xf32>
    %c0_20 = arith.constant 0 : index
    %c0_21 = arith.constant 0 : index
    %29 = vector.load %arg1[%c0_20, %c0_21] : memref<2x4608xf32, #tpu.memory_space<vmem>>, vector<2x512xf32>
    %c0_22 = arith.constant 0 : index
    %c0_23 = arith.constant 0 : index
    %30 = vector.load %arg3[%c0_22, %c0_23] : memref<512x32xf32, #tpu.memory_space<vmem>>, vector<512x32xf32>
    %cst_24 = arith.constant dense<0.000000e+00> : vector<2x32xf32>
    %31 = tpu.matmul %29, %30, %cst_24 {dimension_numbers = #tpu.dot_dimension_numbers<[1], [0], [0], [1], [0, 0, 1, 1], [], []>} : vector<2x512xf32>, vector<512x32xf32>, vector<2x32xf32> -> vector<2x32xf32>
    %32 = arith.addf %31, %27 : vector<2x32xf32>
    %33 = math.tanh %32 : vector<2x32xf32>
    %34 = vector.broadcast %28 : vector<1x32xf32> to vector<2x32xf32>
    %35 = arith.mulf %33, %34 : vector<2x32xf32>
    %cst_25 = arith.constant dense<0.000000e+00> : vector<2xf32>
    %36 = vector.multi_reduction <add>, %35, %cst_25 [1] : vector<2x32xf32> to vector<2xf32>
    %37 = vector.shape_cast %36 : vector<2xf32> to vector<2x1xf32>
    %c0_26 = arith.constant 0 : index
    %c512_27 = arith.constant 512 : index
    %38 = vector.load %arg1[%c0_26, %c512_27] : memref<2x4608xf32, #tpu.memory_space<vmem>>, vector<2x512xf32>
    %c0_28 = arith.constant 0 : index
    %c0_29 = arith.constant 0 : index
    %39 = vector.load %arg3[%c0_28, %c0_29] : memref<512x32xf32, #tpu.memory_space<vmem>>, vector<512x32xf32>
    %cst_30 = arith.constant dense<0.000000e+00> : vector<2x32xf32>
    %40 = tpu.matmul %38, %39, %cst_30 {dimension_numbers = #tpu.dot_dimension_numbers<[1], [0], [0], [1], [0, 0, 1, 1], [], []>} : vector<2x512xf32>, vector<512x32xf32>, vector<2x32xf32> -> vector<2x32xf32>
    %41 = arith.addf %40, %27 : vector<2x32xf32>
    %42 = math.tanh %41 : vector<2x32xf32>
    %43 = vector.broadcast %28 : vector<1x32xf32> to vector<2x32xf32>
    %44 = arith.mulf %42, %43 : vector<2x32xf32>
    %cst_31 = arith.constant dense<0.000000e+00> : vector<2xf32>
    %45 = vector.multi_reduction <add>, %44, %cst_31 [1] : vector<2x32xf32> to vector<2xf32>
    %46 = vector.shape_cast %45 : vector<2xf32> to vector<2x1xf32>
    %c0_32 = arith.constant 0 : index
    %c1024_33 = arith.constant 1024 : index
    %47 = vector.load %arg1[%c0_32, %c1024_33] : memref<2x4608xf32, #tpu.memory_space<vmem>>, vector<2x512xf32>
    %c0_34 = arith.constant 0 : index
    %c0_35 = arith.constant 0 : index
    %48 = vector.load %arg3[%c0_34, %c0_35] : memref<512x32xf32, #tpu.memory_space<vmem>>, vector<512x32xf32>
    %cst_36 = arith.constant dense<0.000000e+00> : vector<2x32xf32>
    %49 = tpu.matmul %47, %48, %cst_36 {dimension_numbers = #tpu.dot_dimension_numbers<[1], [0], [0], [1], [0, 0, 1, 1], [], []>} : vector<2x512xf32>, vector<512x32xf32>, vector<2x32xf32> -> vector<2x32xf32>
    %50 = arith.addf %49, %27 : vector<2x32xf32>
    %51 = math.tanh %50 : vector<2x32xf32>
    %52 = vector.broadcast %28 : vector<1x32xf32> to vector<2x32xf32>
    %53 = arith.mulf %51, %52 : vector<2x32xf32>
    %cst_37 = arith.constant dense<0.000000e+00> : vector<2xf32>
    %54 = vector.multi_reduction <add>, %53, %cst_37 [1] : vector<2x32xf32> to vector<2xf32>
    %55 = vector.shape_cast %54 : vector<2xf32> to vector<2x1xf32>
    %c0_38 = arith.constant 0 : index
    %c1536_39 = arith.constant 1536 : index
    %56 = vector.load %arg1[%c0_38, %c1536_39] : memref<2x4608xf32, #tpu.memory_space<vmem>>, vector<2x512xf32>
    %c0_40 = arith.constant 0 : index
    %c0_41 = arith.constant 0 : index
    %57 = vector.load %arg3[%c0_40, %c0_41] : memref<512x32xf32, #tpu.memory_space<vmem>>, vector<512x32xf32>
    %cst_42 = arith.constant dense<0.000000e+00> : vector<2x32xf32>
    %58 = tpu.matmul %56, %57, %cst_42 {dimension_numbers = #tpu.dot_dimension_numbers<[1], [0], [0], [1], [0, 0, 1, 1], [], []>} : vector<2x512xf32>, vector<512x32xf32>, vector<2x32xf32> -> vector<2x32xf32>
    %59 = arith.addf %58, %27 : vector<2x32xf32>
    %60 = math.tanh %59 : vector<2x32xf32>
    %61 = vector.broadcast %28 : vector<1x32xf32> to vector<2x32xf32>
    %62 = arith.mulf %60, %61 : vector<2x32xf32>
    %cst_43 = arith.constant dense<0.000000e+00> : vector<2xf32>
    %63 = vector.multi_reduction <add>, %62, %cst_43 [1] : vector<2x32xf32> to vector<2xf32>
    %64 = vector.shape_cast %63 : vector<2xf32> to vector<2x1xf32>
    %c0_44 = arith.constant 0 : index
    %c2048_45 = arith.constant 2048 : index
    %65 = vector.load %arg1[%c0_44, %c2048_45] : memref<2x4608xf32, #tpu.memory_space<vmem>>, vector<2x512xf32>
    %c0_46 = arith.constant 0 : index
    %c0_47 = arith.constant 0 : index
    %66 = vector.load %arg3[%c0_46, %c0_47] : memref<512x32xf32, #tpu.memory_space<vmem>>, vector<512x32xf32>
    %cst_48 = arith.constant dense<0.000000e+00> : vector<2x32xf32>
    %67 = tpu.matmul %65, %66, %cst_48 {dimension_numbers = #tpu.dot_dimension_numbers<[1], [0], [0], [1], [0, 0, 1, 1], [], []>} : vector<2x512xf32>, vector<512x32xf32>, vector<2x32xf32> -> vector<2x32xf32>
    %68 = arith.addf %67, %27 : vector<2x32xf32>
    %69 = math.tanh %68 : vector<2x32xf32>
    %70 = vector.broadcast %28 : vector<1x32xf32> to vector<2x32xf32>
    %71 = arith.mulf %69, %70 : vector<2x32xf32>
    %cst_49 = arith.constant dense<0.000000e+00> : vector<2xf32>
    %72 = vector.multi_reduction <add>, %71, %cst_49 [1] : vector<2x32xf32> to vector<2xf32>
    %73 = vector.shape_cast %72 : vector<2xf32> to vector<2x1xf32>
    %c0_50 = arith.constant 0 : index
    %c2560_51 = arith.constant 2560 : index
    %74 = vector.load %arg1[%c0_50, %c2560_51] : memref<2x4608xf32, #tpu.memory_space<vmem>>, vector<2x512xf32>
    %c0_52 = arith.constant 0 : index
    %c0_53 = arith.constant 0 : index
    %75 = vector.load %arg3[%c0_52, %c0_53] : memref<512x32xf32, #tpu.memory_space<vmem>>, vector<512x32xf32>
    %cst_54 = arith.constant dense<0.000000e+00> : vector<2x32xf32>
    %76 = tpu.matmul %74, %75, %cst_54 {dimension_numbers = #tpu.dot_dimension_numbers<[1], [0], [0], [1], [0, 0, 1, 1], [], []>} : vector<2x512xf32>, vector<512x32xf32>, vector<2x32xf32> -> vector<2x32xf32>
    %77 = arith.addf %76, %27 : vector<2x32xf32>
    %78 = math.tanh %77 : vector<2x32xf32>
    %79 = vector.broadcast %28 : vector<1x32xf32> to vector<2x32xf32>
    %80 = arith.mulf %78, %79 : vector<2x32xf32>
    %cst_55 = arith.constant dense<0.000000e+00> : vector<2xf32>
    %81 = vector.multi_reduction <add>, %80, %cst_55 [1] : vector<2x32xf32> to vector<2xf32>
    %82 = vector.shape_cast %81 : vector<2xf32> to vector<2x1xf32>
    %c0_56 = arith.constant 0 : index
    %c3072_57 = arith.constant 3072 : index
    %83 = vector.load %arg1[%c0_56, %c3072_57] : memref<2x4608xf32, #tpu.memory_space<vmem>>, vector<2x512xf32>
    %c0_58 = arith.constant 0 : index
    %c0_59 = arith.constant 0 : index
    %84 = vector.load %arg3[%c0_58, %c0_59] : memref<512x32xf32, #tpu.memory_space<vmem>>, vector<512x32xf32>
    %cst_60 = arith.constant dense<0.000000e+00> : vector<2x32xf32>
    %85 = tpu.matmul %83, %84, %cst_60 {dimension_numbers = #tpu.dot_dimension_numbers<[1], [0], [0], [1], [0, 0, 1, 1], [], []>} : vector<2x512xf32>, vector<512x32xf32>, vector<2x32xf32> -> vector<2x32xf32>
    %86 = arith.addf %85, %27 : vector<2x32xf32>
    %87 = math.tanh %86 : vector<2x32xf32>
    %88 = vector.broadcast %28 : vector<1x32xf32> to vector<2x32xf32>
    %89 = arith.mulf %87, %88 : vector<2x32xf32>
    %cst_61 = arith.constant dense<0.000000e+00> : vector<2xf32>
    %90 = vector.multi_reduction <add>, %89, %cst_61 [1] : vector<2x32xf32> to vector<2xf32>
    %91 = vector.shape_cast %90 : vector<2xf32> to vector<2x1xf32>
    %c0_62 = arith.constant 0 : index
    %c3584_63 = arith.constant 3584 : index
    %92 = vector.load %arg1[%c0_62, %c3584_63] : memref<2x4608xf32, #tpu.memory_space<vmem>>, vector<2x512xf32>
    %c0_64 = arith.constant 0 : index
    %c0_65 = arith.constant 0 : index
    %93 = vector.load %arg3[%c0_64, %c0_65] : memref<512x32xf32, #tpu.memory_space<vmem>>, vector<512x32xf32>
    %cst_66 = arith.constant dense<0.000000e+00> : vector<2x32xf32>
    %94 = tpu.matmul %92, %93, %cst_66 {dimension_numbers = #tpu.dot_dimension_numbers<[1], [0], [0], [1], [0, 0, 1, 1], [], []>} : vector<2x512xf32>, vector<512x32xf32>, vector<2x32xf32> -> vector<2x32xf32>
    %95 = arith.addf %94, %27 : vector<2x32xf32>
    %96 = math.tanh %95 : vector<2x32xf32>
    %97 = vector.broadcast %28 : vector<1x32xf32> to vector<2x32xf32>
    %98 = arith.mulf %96, %97 : vector<2x32xf32>
    %cst_67 = arith.constant dense<0.000000e+00> : vector<2xf32>
    %99 = vector.multi_reduction <add>, %98, %cst_67 [1] : vector<2x32xf32> to vector<2xf32>
    %100 = vector.shape_cast %99 : vector<2xf32> to vector<2x1xf32>
    %c0_68 = arith.constant 0 : index
    %c4096_69 = arith.constant 4096 : index
    %101 = vector.load %arg1[%c0_68, %c4096_69] : memref<2x4608xf32, #tpu.memory_space<vmem>>, vector<2x512xf32>
    %c0_70 = arith.constant 0 : index
    %c0_71 = arith.constant 0 : index
    %102 = vector.load %arg3[%c0_70, %c0_71] : memref<512x32xf32, #tpu.memory_space<vmem>>, vector<512x32xf32>
    %cst_72 = arith.constant dense<0.000000e+00> : vector<2x32xf32>
    %103 = tpu.matmul %101, %102, %cst_72 {dimension_numbers = #tpu.dot_dimension_numbers<[1], [0], [0], [1], [0, 0, 1, 1], [], []>} : vector<2x512xf32>, vector<512x32xf32>, vector<2x32xf32> -> vector<2x32xf32>
    %104 = arith.addf %103, %27 : vector<2x32xf32>
    %105 = math.tanh %104 : vector<2x32xf32>
    %106 = vector.broadcast %28 : vector<1x32xf32> to vector<2x32xf32>
    %107 = arith.mulf %105, %106 : vector<2x32xf32>
    %cst_73 = arith.constant dense<0.000000e+00> : vector<2xf32>
    %108 = vector.multi_reduction <add>, %107, %cst_73 [1] : vector<2x32xf32> to vector<2xf32>
    %109 = vector.shape_cast %108 : vector<2xf32> to vector<2x1xf32>
    %110 = arith.maximumf %37, %46 : vector<2x1xf32>
    %111 = arith.maximumf %110, %55 : vector<2x1xf32>
    %112 = arith.maximumf %111, %64 : vector<2x1xf32>
    %113 = arith.maximumf %112, %73 : vector<2x1xf32>
    %114 = arith.maximumf %113, %82 : vector<2x1xf32>
    %115 = arith.maximumf %114, %91 : vector<2x1xf32>
    %116 = arith.maximumf %115, %100 : vector<2x1xf32>
    %117 = arith.maximumf %116, %109 : vector<2x1xf32>
    %118 = arith.subf %37, %117 : vector<2x1xf32>
    %119 = math.exp %118 : vector<2x1xf32>
    %120 = arith.subf %46, %117 : vector<2x1xf32>
    %121 = math.exp %120 : vector<2x1xf32>
    %122 = arith.subf %55, %117 : vector<2x1xf32>
    %123 = math.exp %122 : vector<2x1xf32>
    %124 = arith.subf %64, %117 : vector<2x1xf32>
    %125 = math.exp %124 : vector<2x1xf32>
    %126 = arith.subf %73, %117 : vector<2x1xf32>
    %127 = math.exp %126 : vector<2x1xf32>
    %128 = arith.subf %82, %117 : vector<2x1xf32>
    %129 = math.exp %128 : vector<2x1xf32>
    %130 = arith.subf %91, %117 : vector<2x1xf32>
    %131 = math.exp %130 : vector<2x1xf32>
    %132 = arith.subf %100, %117 : vector<2x1xf32>
    %133 = math.exp %132 : vector<2x1xf32>
    %134 = arith.subf %109, %117 : vector<2x1xf32>
    %135 = math.exp %134 : vector<2x1xf32>
    %136 = arith.addf %119, %121 : vector<2x1xf32>
    %137 = arith.addf %136, %123 : vector<2x1xf32>
    %138 = arith.addf %137, %125 : vector<2x1xf32>
    %139 = arith.addf %138, %127 : vector<2x1xf32>
    %140 = arith.addf %139, %129 : vector<2x1xf32>
    %141 = arith.addf %140, %131 : vector<2x1xf32>
    %142 = arith.addf %141, %133 : vector<2x1xf32>
    %143 = arith.addf %142, %135 : vector<2x1xf32>
    %cst_74 = arith.constant 1.000000e+00 : f32
    %144 = vector.broadcast %cst_74 : f32 to vector<2x1xf32>
    %145 = arith.divf %144, %143 : vector<2x1xf32>
    %146 = arith.mulf %119, %145 : vector<2x1xf32>
    %c0_75 = arith.constant 0 : index
    %c0_76 = arith.constant 0 : index
    %147 = vector.load %arg7[%c0_75, %c0_76] : memref<2x9xf32, #tpu.memory_space<vmem>>, vector<2x1xf32>
    tpu.vector_store %arg7[%c0_75, %c0_76], %146 {strides = array<i32>} : memref<2x9xf32, #tpu.memory_space<vmem>>, vector<2x1xf32>,
    %148 = arith.mulf %121, %145 : vector<2x1xf32>
    %c0_77 = arith.constant 0 : index
    %c1 = arith.constant 1 : index
    %149 = vector.load %arg7[%c0_77, %c1] : memref<2x9xf32, #tpu.memory_space<vmem>>, vector<2x1xf32>
    tpu.vector_store %arg7[%c0_77, %c1], %148 {strides = array<i32>} : memref<2x9xf32, #tpu.memory_space<vmem>>, vector<2x1xf32>,
    %150 = arith.mulf %123, %145 : vector<2x1xf32>
    %c0_78 = arith.constant 0 : index
    %c2 = arith.constant 2 : index
    %151 = vector.load %arg7[%c0_78, %c2] : memref<2x9xf32, #tpu.memory_space<vmem>>, vector<2x1xf32>
    tpu.vector_store %arg7[%c0_78, %c2], %150 {strides = array<i32>} : memref<2x9xf32, #tpu.memory_space<vmem>>, vector<2x1xf32>,
    %152 = arith.mulf %125, %145 : vector<2x1xf32>
    %c0_79 = arith.constant 0 : index
    %c3 = arith.constant 3 : index
    %153 = vector.load %arg7[%c0_79, %c3] : memref<2x9xf32, #tpu.memory_space<vmem>>, vector<2x1xf32>
    tpu.vector_store %arg7[%c0_79, %c3], %152 {strides = array<i32>} : memref<2x9xf32, #tpu.memory_space<vmem>>, vector<2x1xf32>,
    %154 = arith.mulf %127, %145 : vector<2x1xf32>
    %c0_80 = arith.constant 0 : index
    %c4 = arith.constant 4 : index
    %155 = vector.load %arg7[%c0_80, %c4] : memref<2x9xf32, #tpu.memory_space<vmem>>, vector<2x1xf32>
    tpu.vector_store %arg7[%c0_80, %c4], %154 {strides = array<i32>} : memref<2x9xf32, #tpu.memory_space<vmem>>, vector<2x1xf32>,
    %156 = arith.mulf %129, %145 : vector<2x1xf32>
    %c0_81 = arith.constant 0 : index
    %c5 = arith.constant 5 : index
    %157 = vector.load %arg7[%c0_81, %c5] : memref<2x9xf32, #tpu.memory_space<vmem>>, vector<2x1xf32>
    tpu.vector_store %arg7[%c0_81, %c5], %156 {strides = array<i32>} : memref<2x9xf32, #tpu.memory_space<vmem>>, vector<2x1xf32>,
    %158 = arith.mulf %131, %145 : vector<2x1xf32>
    %c0_82 = arith.constant 0 : index
    %c6 = arith.constant 6 : index
    %159 = vector.load %arg7[%c0_82, %c6] : memref<2x9xf32, #tpu.memory_space<vmem>>, vector<2x1xf32>
    tpu.vector_store %arg7[%c0_82, %c6], %158 {strides = array<i32>} : memref<2x9xf32, #tpu.memory_space<vmem>>, vector<2x1xf32>,
    %160 = arith.mulf %133, %145 : vector<2x1xf32>
    %c0_83 = arith.constant 0 : index
    %c7 = arith.constant 7 : index
    %161 = vector.load %arg7[%c0_83, %c7] : memref<2x9xf32, #tpu.memory_space<vmem>>, vector<2x1xf32>
    tpu.vector_store %arg7[%c0_83, %c7], %160 {strides = array<i32>} : memref<2x9xf32, #tpu.memory_space<vmem>>, vector<2x1xf32>,
    %162 = arith.mulf %135, %145 : vector<2x1xf32>
    %c0_84 = arith.constant 0 : index
    %c8 = arith.constant 8 : index
    %163 = vector.load %arg7[%c0_84, %c8] : memref<2x9xf32, #tpu.memory_space<vmem>>, vector<2x1xf32>
    tpu.vector_store %arg7[%c0_84, %c8], %162 {strides = array<i32>} : memref<2x9xf32, #tpu.memory_space<vmem>>, vector<2x1xf32>,
    return
  }
  func.func @transform_0(%arg0: i32) -> (i32, i32) {
    %c0_i32 = arith.constant 0 : i32
    %c0_i32_0 = arith.constant 0 : i32
    return %arg0, %c0_i32 : i32, i32
  }
  func.func @transform_1(%arg0: i32) -> (i32, i32) {
    %c0_i32 = arith.constant 0 : i32
    %c0_i32_0 = arith.constant 0 : i32
    %c0_i32_1 = arith.constant 0 : i32
    return %c0_i32, %c0_i32_0 : i32, i32
  }
  func.func @transform_2(%arg0: i32) -> (i32, i32) {
    %c0_i32 = arith.constant 0 : i32
    %c0_i32_0 = arith.constant 0 : i32
    %c0_i32_1 = arith.constant 0 : i32
    return %c0_i32, %c0_i32_0 : i32, i32
  }
  func.func @transform_3(%arg0: i32) -> (i32, i32) {
    %c0_i32 = arith.constant 0 : i32
    %c0_i32_0 = arith.constant 0 : i32
    %c0_i32_1 = arith.constant 0 : i32
    return %c0_i32, %c0_i32_0 : i32, i32
  }
  func.func @transform_4(%arg0: i32) -> (i32, i32) {
    %c0_i32 = arith.constant 0 : i32
    %c0_i32_0 = arith.constant 0 : i32
    %c0_i32_1 = arith.constant 0 : i32
    return %c0_i32, %c0_i32_0 : i32, i32
  }
  func.func @transform_5(%arg0: i32) -> (i32, i32) {
    %c0_i32 = arith.constant 0 : i32
    %c0_i32_0 = arith.constant 0 : i32
    %c0_i32_1 = arith.constant 0 : i32
    return %c0_i32, %c0_i32_0 : i32, i32
  }
  func.func @transform_6(%arg0: i32) -> (i32, i32) {
    %c0_i32 = arith.constant 0 : i32
    %c0_i32_0 = arith.constant 0 : i32
    return %arg0, %c0_i32 : i32, i32
  }
}

</mosaic_0001>

<bundles_post_ra>
// kernel: tpu_custom_call.1
= control target key start
LH: loop header
LB: loop body
LE: loop exit
PB: predicated region body
PF: predicated region fallthrough
CT: control target
= control target key end

     0   :  { %11 = vsyncpa [#allocation3], 0  ;;  %s4879_s0 = inlined_call_operand.vmem [shape: f32[2,4608], index: 0, kind: input, shape index: {}]   ;;  %s4880_s1 = inlined_call_operand.hbm [shape: f32[512,512], index: 1, kind: input, shape index: {}]   ;;  %s4881_s2 = inlined_call_operand.vmem [shape: f32[512,32], index: 2, kind: input, shape index: {}]   ;;  %s4882_s3 = inlined_call_operand.vmem [shape: f32[512,32], index: 3, kind: input, shape index: {}]   ;;  %s4883_s4 = inlined_call_operand.vmem [shape: f32[1,32], index: 4, kind: input, shape index: {}]   ;;  %s4884_s5 = inlined_call_operand.vmem [shape: f32[1,32], index: 5, kind: input, shape index: {}]   ;;  %s4885_s6 = inlined_call_operand.hbm [shape: f32[2,9], index: 6, kind: output, shape index: {}]  }
   0x1   :  { %12 = vsyncpa [#allocation4], 0  ;;  %s3366_s21 = smov [#allocation2]  }
   0x2   :  { %s20_s22 = sshll.u32 %s3366_s21, 4  ;;  %s21_s22 = int_to_ptr.vmem [resolvable:$true] %s20_s22 }
   0x3   :  { %s3330_s23 = scalar_lea.vmem %s21_s22, 32768  ;;  %p3335_p1 = scmp.lt.s32.totalorder %s21_s22, %s21_s22 }
   0x4   :  { %p3331_p0 = scmp.ne.s32.totalorder %s21_s22, %s3330_s23  ;;  %p3336_p2 = scmp.lt.s32.totalorder %s3330_s23, %s3330_s23 }
   0x6   :  { %p3337_p3 = por %p3336_p2, %p3335_p1 }
   0x8   :  { %p3338_p4 = pnand %p3337_p3, %p3331_p0 }
   0xa   :  { %3341 = shalt.err (!%p3338_p4)
}
   0xb   :  { %s3367_s24 = smov 512   ;;  %s3368_s25 = smov 32  }
   0xc   :  { %26 = dma.hbm_to_vmem [thread:$0]  %s4880_s1, 32768, %s21_s22, [#allocation3], %s3367_s24, %s3367_s24, %s3368_s25  }
   0xd   :  { %3362 = dma.done.wait [#allocation3], 32768  }
   0xe   :  { %3363 = vsyncadd [#allocation3], 4294934528  ;;  %v117_v0 = vld [vmem:[#allocation2 + $0x1e8] sm:$0xff]  ;;  %v116_v2 = vld [vmem:[#allocation2 + $0x1e0] sm:$0xff]  ;;  %vm1068_vm0 = vcmask 254976   ;;  %vm2454_vm1 = vcmask 1024  }
   0xf   :  { %v245_v1 = vld [vmem:[#allocation2 + $0x5e8] sm:$0xff]  ;;  %334 = vmatprep.subr.mxu0 %v117_v0  ;;  %v244_v3 = vld [vmem:[#allocation2 + $0x5e0] sm:$0xff]  ;;  %vm2457_vm2 = vcmask 9224   ;;  %vm2460_vm3 = vcmask 17424   ;;  %vm2463_vm4 = vcmask 25624   ;;  %vm2466_vm5 = vcmask 33824  }
  0x10   :  { %405 = vmatprep.subr.mxu1 %v245_v1  ;;  %v113_v4 = vld [vmem:[#allocation2 + $0x1c8] sm:$0xff]  ;;  %335 = vmatpush1.msra.mxu0 %v116_v2  ;;  %v112_v6 = vld [vmem:[#allocation2 + $0x1c0] sm:$0xff]  ;;  %vm2469_vm6 = vcmask 42024   ;;  %vm2472_vm7 = vcmask 50224   ;;  %vm2475_vm8 = vcmask 58424   ;;  %vm2478_vm9 = vcmask 66624  }
  0x11   :  { %v241_v5 = vld [vmem:[#allocation2 + $0x5c8] sm:$0xff]  ;;  %406 = vmatpush1.msra.mxu1 %v244_v3  ;;  %v240_v7 = vld [vmem:[#allocation2 + $0x5c0] sm:$0xff]  ;;  %336 = vmatprep.subr.mxu0 %v113_v4 }
  0x12   :  { %v109_v8 = vld [vmem:[#allocation2 + $0x1a8] sm:$0xff]  ;;  %407 = vmatprep.subr.mxu1 %v241_v5  ;;  %v108_v10 = vld [vmem:[#allocation2 + $0x1a0] sm:$0xff]  ;;  %337 = vmatpush1.msra.mxu0 %v112_v6 }
  0x13   :  { %v237_v9 = vld [vmem:[#allocation2 + $0x5a8] sm:$0xff]  ;;  %v236_v11 = vld [vmem:[#allocation2 + $0x5a0] sm:$0xff]  ;;  %408 = vmatpush1.msra.mxu1 %v240_v7  ;;  %338 = vmatprep.subr.mxu0 %v109_v8 }
  0x14   :  { %v105_v12 = vld [vmem:[#allocation2 + $0x188] sm:$0xff]  ;;  %409 = vmatprep.subr.mxu1 %v237_v9  ;;  %v104_v14 = vld [vmem:[#allocation2 + $0x180] sm:$0xff]  ;;  %339 = vmatpush1.msra.mxu0 %v108_v10 }
  0x15   :  { %v233_v13 = vld [vmem:[#allocation2 + $0x588] sm:$0xff]  ;;  %v232_v15 = vld [vmem:[#allocation2 + $0x580] sm:$0xff]  ;;  %410 = vmatpush1.msra.mxu1 %v236_v11  ;;  %340 = vmatprep.subr.mxu0 %v105_v12 }
  0x16   :  { %v101_v16 = vld [vmem:[#allocation2 + $0x168] sm:$0xff]  ;;  %411 = vmatprep.subr.mxu1 %v233_v13  ;;  %v100_v18 = vld [vmem:[#allocation2 + $0x160] sm:$0xff]  ;;  %341 = vmatpush1.msra.mxu0 %v104_v14 }
  0x17   :  { %v229_v17 = vld [vmem:[#allocation2 + $0x568] sm:$0xff]  ;;  %v228_v19 = vld [vmem:[#allocation2 + $0x560] sm:$0xff]  ;;  %412 = vmatpush1.msra.mxu1 %v232_v15  ;;  %342 = vmatprep.subr.mxu0 %v101_v16 }
  0x18   :  { %v97_v20 = vld [vmem:[#allocation2 + $0x148] sm:$0xff]  ;;  %413 = vmatprep.subr.mxu1 %v229_v17  ;;  %v96_v22 = vld [vmem:[#allocation2 + $0x140] sm:$0xff]  ;;  %343 = vmatpush1.msra.mxu0 %v100_v18 }
  0x19   :  { %v225_v21 = vld [vmem:[#allocation2 + $0x548] sm:$0xff]  ;;  %v224_v23 = vld [vmem:[#allocation2 + $0x540] sm:$0xff]  ;;  %414 = vmatpush1.msra.mxu1 %v228_v19  ;;  %344 = vmatprep.subr.mxu0 %v97_v20 }
  0x1a   :  { %v93_v24 = vld [vmem:[#allocation2 + $0x128] sm:$0xff]  ;;  %415 = vmatprep.subr.mxu1 %v225_v21  ;;  %v92_v26 = vld [vmem:[#allocation2 + $0x120] sm:$0xff]  ;;  %345 = vmatpush1.msra.mxu0 %v96_v22 }
  0x1b   :  { %v221_v25 = vld [vmem:[#allocation2 + $0x528] sm:$0xff]  ;;  %v220_v27 = vld [vmem:[#allocation2 + $0x520] sm:$0xff]  ;;  %416 = vmatpush1.msra.mxu1 %v224_v23  ;;  %346 = vmatprep.subr.mxu0 %v93_v24 }
  0x1c   :  { %v89_v28 = vld [vmem:[#allocation2 + $0x108] sm:$0xff]  ;;  %417 = vmatprep.subr.mxu1 %v221_v25  ;;  %v88_v30 = vld [vmem:[#allocation2 + $0x100] sm:$0xff]  ;;  %347 = vmatpush1.msra.mxu0 %v92_v26 }
  0x1d   :  { %v217_v29 = vld [vmem:[#allocation2 + $0x508] sm:$0xff]  ;;  %v216_v31 = vld [vmem:[#allocation2 + $0x500] sm:$0xff]  ;;  %418 = vmatpush1.msra.mxu1 %v220_v27  ;;  %348 = vmatprep.subr.mxu0 %v89_v28 }
  0x1e   :  { %v85_v32 = vld [vmem:[#allocation2 + $0xe8] sm:$0xff]  ;;  %419 = vmatprep.subr.mxu1 %v217_v29  ;;  %v84_v34 = vld [vmem:[#allocation2 + $0xe0] sm:$0xff]  ;;  %349 = vmatpush1.msra.mxu0 %v88_v30 }
  0x1f   :  { %v213_v33 = vld [vmem:[#allocation2 + $0x4e8] sm:$0xff]  ;;  %v212_v35 = vld [vmem:[#allocation2 + $0x4e0] sm:$0xff]  ;;  %420 = vmatpush1.msra.mxu1 %v216_v31  ;;  %350 = vmatprep.subr.mxu0 %v85_v32  ;;  %v41_v31 = vld [vmem:[%s4879_s0 + $0x10] sm:$0xff] }
  0x20   :  { %v81_v36 = vld [vmem:[#allocation2 + $0xc8] sm:$0xff]  ;;  %421 = vmatprep.subr.mxu1 %v213_v33  ;;  %v80_v38 = vld [vmem:[#allocation2 + $0xc0] sm:$0xff]  ;;  %351 = vmatpush1.msra.mxu0 %v84_v34  ;;  %v43_v34 = vld [vmem:[%s4879_s0 + $0x18] sm:$0xff] }
  0x21   :  { %v209_v37 = vld [vmem:[#allocation2 + $0x4c8] sm:$0xff]  ;;  %v208_v39 = vld [vmem:[#allocation2 + $0x4c0] sm:$0xff]  ;;  %422 = vmatpush1.msra.mxu1 %v212_v35  ;;  %352 = vmatprep.subr.mxu0 %v81_v36 }
  0x22   :  { %v77_v40 = vld [vmem:[#allocation2 + $0xa8] sm:$0xff]  ;;  %423 = vmatprep.subr.mxu1 %v209_v37  ;;  %v76_v42 = vld [vmem:[#allocation2 + $0xa0] sm:$0xff]  ;;  %353 = vmatpush1.msra.mxu0 %v80_v38 }
  0x23   :  { %v205_v41 = vld [vmem:[#allocation2 + $0x4a8] sm:$0xff]  ;;  %v204_v43 = vld [vmem:[#allocation2 + $0x4a0] sm:$0xff]  ;;  %424 = vmatpush1.msra.mxu1 %v208_v39  ;;  %354 = vmatprep.subr.mxu0 %v77_v40 }
  0x24   :  { %v73_v44 = vld [vmem:[#allocation2 + $0x88] sm:$0xff]  ;;  %425 = vmatprep.subr.mxu1 %v205_v41  ;;  %v72_v46 = vld [vmem:[#allocation2 + $0x80] sm:$0xff]  ;;  %355 = vmatpush1.msra.mxu0 %v76_v42 }
  0x25   :  { %v201_v45 = vld [vmem:[#allocation2 + $0x488] sm:$0xff]  ;;  %v200_v47 = vld [vmem:[#allocation2 + $0x480] sm:$0xff]  ;;  %426 = vmatpush1.msra.mxu1 %v204_v43  ;;  %356 = vmatprep.subr.mxu0 %v73_v44 }
  0x26   :  { %v69_v48 = vld [vmem:[#allocation2 + $0x68] sm:$0xff]  ;;  %427 = vmatprep.subr.mxu1 %v201_v45  ;;  %v68_v50 = vld [vmem:[#allocation2 + $0x60] sm:$0xff]  ;;  %357 = vmatpush1.msra.mxu0 %v72_v46 }
  0x27   :  { %v197_v49 = vld [vmem:[#allocation2 + $0x468] sm:$0xff]  ;;  %v196_v51 = vld [vmem:[#allocation2 + $0x460] sm:$0xff]  ;;  %428 = vmatpush1.msra.mxu1 %v200_v47  ;;  %358 = vmatprep.subr.mxu0 %v69_v48 }
  0x28   :  { %v65_v52 = vld [vmem:[#allocation2 + $0x48] sm:$0xff]  ;;  %429 = vmatprep.subr.mxu1 %v197_v49  ;;  %v64_v54 = vld [vmem:[#allocation2 + $0x40] sm:$0xff]  ;;  %359 = vmatpush1.msra.mxu0 %v68_v50  ;;  %v3369_v50 = vmov 1983009808  }
  0x29   :  { %v193_v53 = vld [vmem:[#allocation2 + $0x448] sm:$0xff]  ;;  %v192_v55 = vld [vmem:[#allocation2 + $0x440] sm:$0xff]  ;;  %430 = vmatpush1.msra.mxu1 %v196_v51  ;;  %360 = vmatprep.subr.mxu0 %v65_v52  ;;  %v315_v51 = vunpack.c.l.s4 %v3369_v50  ;;  %v317_v52 = vlaneseq  ;;  %v230_v50 = vld [vmem:[#allocation2 + $0x570] sm:$0xff] }
  0x2a   :  { %v61_v56 = vld [vmem:[#allocation2 + $0x28] sm:$0xff]  ;;  %431 = vmatprep.subr.mxu1 %v193_v53  ;;  %v60_v58 = vld [vmem:[#allocation2 + $0x20] sm:$0xff]  ;;  %361 = vmatpush1.msra.mxu0 %v64_v54 }
  0x2b   :  { %v189_v57 = vld [vmem:[#allocation2 + $0x428] sm:$0xff]  ;;  %v188_v59 = vld [vmem:[#allocation2 + $0x420] sm:$0xff]  ;;  %432 = vmatpush1.msra.mxu1 %v192_v55  ;;  %362 = vmatprep.subr.mxu0 %v61_v56  ;;  %v49_v55 = vld [vmem:[%s4879_s0 + $0x30] sm:$0xff] }
  0x2c   :  { %v57_v60 = vld [vmem:[#allocation2 + $0x8] sm:$0xff]  ;;  %433 = vmatprep.subr.mxu1 %v189_v57  ;;  %v56_v62 = vld [vmem:[#allocation2] sm:$0xff]  ;;  %363 = vmatpush1.msra.mxu0 %v60_v58 }
  0x2d   :  { %v185_v61 = vld [vmem:[#allocation2 + $0x408] sm:$0xff]  ;;  %v184_v63 = vld [vmem:[#allocation2 + $0x400] sm:$0xff]  ;;  %434 = vmatpush1.msra.mxu1 %v188_v59  ;;  %364 = vmatprep.subr.mxu0 %v57_v60 }
  0x2e   :  { %v181_v0 = vld [vmem:[#allocation2 + $0x3e8] sm:$0xff]  ;;  %435 = vmatprep.subr.mxu1 %v185_v61  ;;  %v180_v2 = vld [vmem:[#allocation2 + $0x3e0] sm:$0xff]  ;;  %365 = vmatpush1.msra.mxu0 %v56_v62  ;;  %v51_v61 = vld [vmem:[%s4879_s0 + $0x38] sm:$0xff] }
  0x2f   :  { %v309_v1 = vld [vmem:[#allocation2 + $0x7e8] sm:$0xff]  ;;  %v308_v3 = vld [vmem:[#allocation2 + $0x7e0] sm:$0xff]  ;;  %436 = vmatpush1.msra.mxu1 %v184_v63  ;;  %366 = vmatprep.subr.mxu0 %v181_v0 }
  0x30   :  { %v177_v4 = vld [vmem:[#allocation2 + $0x3c8] sm:$0xff]  ;;  %437 = vmatprep.subr.mxu1 %v309_v1  ;;  %v176_v6 = vld [vmem:[#allocation2 + $0x3c0] sm:$0xff]  ;;  %367 = vmatpush2.msra.mxu0 %v180_v2  ;;  %v316_v1 = vunpack.c.0.s8 %v315_v51  ;;  %v318_v2 = vshrl.u32 %v317_v52, 7  ;;  %v98_v51 = vld [vmem:[#allocation2 + $0x150] sm:$0xff] }
  0x31   :  { %v305_v5 = vld [vmem:[#allocation2 + $0x7c8] sm:$0xff]  ;;  %v304_v7 = vld [vmem:[#allocation2 + $0x7c0] sm:$0xff]  ;;  %438 = vmatpush2.msra.mxu1 %v308_v3  ;;  %368 = vmatprep.subr.mxu0 %v177_v4  ;;  %v227_v52 = vld [vmem:[#allocation2 + $0x558] sm:$0xff] }
  0x32   :  { %v173_v8 = vld [vmem:[#allocation2 + $0x3a8] sm:$0xff]  ;;  %439 = vmatprep.subr.mxu1 %v305_v5  ;;  %v172_v10 = vld [vmem:[#allocation2 + $0x3a0] sm:$0xff]  ;;  %369 = vmatpush2.msra.mxu0 %v176_v6 }
  0x33   :  { %v301_v9 = vld [vmem:[#allocation2 + $0x7a8] sm:$0xff]  ;;  %v300_v11 = vld [vmem:[#allocation2 + $0x7a0] sm:$0xff]  ;;  %440 = vmatpush2.msra.mxu1 %v304_v7  ;;  %370 = vmatprep.subr.mxu0 %v173_v8 }
  0x34   :  { %v169_v12 = vld [vmem:[#allocation2 + $0x388] sm:$0xff]  ;;  %441 = vmatprep.subr.mxu1 %v301_v9  ;;  %v168_v14 = vld [vmem:[#allocation2 + $0x380] sm:$0xff]  ;;  %371 = vmatpush2.msra.mxu0 %v172_v10 }
  0x35   :  { %v297_v13 = vld [vmem:[#allocation2 + $0x788] sm:$0xff]  ;;  %v296_v15 = vld [vmem:[#allocation2 + $0x780] sm:$0xff]  ;;  %442 = vmatpush2.msra.mxu1 %v300_v11  ;;  %372 = vmatprep.subr.mxu0 %v169_v12 }
  0x36   :  { %v165_v16 = vld [vmem:[#allocation2 + $0x368] sm:$0xff]  ;;  %443 = vmatprep.subr.mxu1 %v297_v13  ;;  %v164_v18 = vld [vmem:[#allocation2 + $0x360] sm:$0xff]  ;;  %373 = vmatpush2.msra.mxu0 %v168_v14  ;;  %v3439_v14 = vsub.s32 %v316_v1, %v318_v2  ;;  %v83_v1 = vld [vmem:[#allocation2 + $0xd8] sm:$0xff] }
  0x37   :  { %v293_v17 = vld [vmem:[#allocation2 + $0x768] sm:$0xff]  ;;  %v292_v19 = vld [vmem:[#allocation2 + $0x760] sm:$0xff]  ;;  %444 = vmatpush2.msra.mxu1 %v296_v15  ;;  %374 = vmatprep.subr.mxu0 %v165_v16  ;;  %v214_v2 = vld [vmem:[#allocation2 + $0x4f0] sm:$0xff] }
  0x38   :  { %v161_v20 = vld [vmem:[#allocation2 + $0x348] sm:$0xff]  ;;  %445 = vmatprep.subr.mxu1 %v293_v17  ;;  %v160_v22 = vld [vmem:[#allocation2 + $0x340] sm:$0xff]  ;;  %375 = vmatpush2.msra.mxu0 %v164_v18 }
  0x39   :  { %v289_v21 = vld [vmem:[#allocation2 + $0x748] sm:$0xff]  ;;  %v288_v23 = vld [vmem:[#allocation2 + $0x740] sm:$0xff]  ;;  %446 = vmatpush2.msra.mxu1 %v292_v19  ;;  %376 = vmatprep.subr.mxu0 %v161_v20 }
  0x3a   :  { %v157_v24 = vld [vmem:[#allocation2 + $0x328] sm:$0xff]  ;;  %v3412_v26 = vld [vmem:[%s4879_s0] sm:$0xff]  ;;  %447 = vmatprep.subr.mxu1 %v289_v21  ;;  %377 = vmatpush2.msra.mxu0 %v160_v22 }
  0x3b   :  { %v285_v25 = vld [vmem:[#allocation2 + $0x728] sm:$0xff]  ;;  %v156_v28 = vld [vmem:[#allocation2 + $0x320] sm:$0xff]  ;;  %448 = vmatpush2.msra.mxu1 %v288_v23  ;;  %378 = vmatprep.subr.mxu0 %v157_v24 }
  0x3c   :  { %v39_v27 = vld [vmem:[%s4879_s0 + $0x8] sm:$0xff]  ;;  %v284_v29 = vld [vmem:[#allocation2 + $0x720] sm:$0xff]  ;;  %449 = vmatprep.subr.mxu1 %v285_v25  ;;  %379 = vmatpush2.msra.mxu0 %v156_v28 }
  0x3d   :  { %v40_v30 = vadd.f32 %v39_v27, %v3412_v26  ;;  %v153_v32 = vld [vmem:[#allocation2 + $0x308] sm:$0xff]  ;;  %v152_v35 = vld [vmem:[#allocation2 + $0x300] sm:$0xff]  ;;  %450 = vmatpush2.msra.mxu1 %v284_v29  ;;  %v119_v27 = vld [vmem:[#allocation2 + $0x1f8] sm:$0xff] }
  0x3e   :  { %v281_v33 = vld [vmem:[#allocation2 + $0x708] sm:$0xff]  ;;  %v280_v36 = vld [vmem:[#allocation2 + $0x700] sm:$0xff]  ;;  %380 = vmatprep.subr.mxu0 %v153_v32 }
  0x3f   :  { %v42_v37 = vadd.f32 %v41_v31, %v40_v30  ;;  %v149_v38 = vld [vmem:[#allocation2 + $0x2e8] sm:$0xff]  ;;  %v45_v40 = vld [vmem:[%s4879_s0 + $0x20] sm:$0xff]  ;;  %451 = vmatprep.subr.mxu1 %v281_v33  ;;  %381 = vmatpush2.msra.mxu0 %v152_v35  ;;  %v247_v30 = vld [vmem:[#allocation2 + $0x5f8] sm:$0xff] }
  0x40   :  { %v277_v39 = vld [vmem:[#allocation2 + $0x6e8] sm:$0xff]  ;;  %v148_v41 = vld [vmem:[#allocation2 + $0x2e0] sm:$0xff]  ;;  %452 = vmatpush2.msra.mxu1 %v280_v36  ;;  %382 = vmatprep.subr.mxu0 %v149_v38  ;;  %v118_v31 = vld [vmem:[#allocation2 + $0x1f0] sm:$0xff] }
  0x41   :  { %v276_v42 = vld [vmem:[#allocation2 + $0x6e0] sm:$0xff]  ;;  %v44_v43 = vadd.f32 %v43_v34, %v42_v37  ;;  %v145_v44 = vld [vmem:[#allocation2 + $0x2c8] sm:$0xff]  ;;  %453 = vmatprep.subr.mxu1 %v277_v39  ;;  %383 = vmatpush2.msra.mxu0 %v148_v41  ;;  %v115_v33 = vld [vmem:[#allocation2 + $0x1d8] sm:$0xff] }
  0x42   :  { %v273_v45 = vld [vmem:[#allocation2 + $0x6c8] sm:$0xff]  ;;  %v144_v47 = vld [vmem:[#allocation2 + $0x2c0] sm:$0xff]  ;;  %454 = vmatpush2.msra.mxu1 %v276_v42  ;;  %384 = vmatprep.subr.mxu0 %v145_v44  ;;  %v246_v34 = vld [vmem:[#allocation2 + $0x5f0] sm:$0xff] }
  0x43   :  { %v47_v46 = vld [vmem:[%s4879_s0 + $0x28] sm:$0xff]  ;;  %v272_v48 = vld [vmem:[#allocation2 + $0x6c0] sm:$0xff]  ;;  %v46_v49 = vadd.f32 %v45_v40, %v44_v43  ;;  %455 = vmatprep.subr.mxu1 %v273_v45  ;;  %385 = vmatpush2.msra.mxu0 %v144_v47  ;;  %v114_v35 = vld [vmem:[#allocation2 + $0x1d0] sm:$0xff] }
  0x44   :  { %v141_v53 = vld [vmem:[#allocation2 + $0x2a8] sm:$0xff]  ;;  %v140_v56 = vld [vmem:[#allocation2 + $0x2a0] sm:$0xff]  ;;  %456 = vmatpush2.msra.mxu1 %v272_v48  ;;  %v243_v36 = vld [vmem:[#allocation2 + $0x5d8] sm:$0xff] }
  0x45   :  { %v269_v54 = vld [vmem:[#allocation2 + $0x6a8] sm:$0xff]  ;;  %v268_v57 = vld [vmem:[#allocation2 + $0x6a0] sm:$0xff]  ;;  %v48_v58 = vadd.f32 %v47_v46, %v46_v49  ;;  %386 = vmatprep.subr.mxu0 %v141_v53  ;;  %v111_v37 = vld [vmem:[#allocation2 + $0x1b8] sm:$0xff] }
  0x46   :  { %v137_v59 = vld [vmem:[#allocation2 + $0x288] sm:$0xff]  ;;  %457 = vmatprep.subr.mxu1 %v269_v54  ;;  %v136_v62 = vld [vmem:[#allocation2 + $0x280] sm:$0xff]  ;;  %387 = vmatpush2.msra.mxu0 %v140_v56  ;;  %v242_v38 = vld [vmem:[#allocation2 + $0x5d0] sm:$0xff] }
  0x47   :  { %v265_v60 = vld [vmem:[#allocation2 + $0x688] sm:$0xff]  ;;  %v264_v63 = vld [vmem:[#allocation2 + $0x680] sm:$0xff]  ;;  %v50_v0 = vadd.f32 %v49_v55, %v48_v58  ;;  %458 = vmatpush2.msra.mxu1 %v268_v57  ;;  %388 = vmatprep.subr.mxu0 %v137_v59  ;;  %v110_v39 = vld [vmem:[#allocation2 + $0x1b0] sm:$0xff] }
  0x48   :  { %v133_v3 = vld [vmem:[#allocation2 + $0x268] sm:$0xff]  ;;  %v53_v5 = vld [vmem:[%s4879_s0 + $0x40] sm:$0xff]  ;;  %459 = vmatprep.subr.mxu1 %v265_v60  ;;  %389 = vmatpush2.msra.mxu0 %v136_v62  ;;  %v239_v40 = vld [vmem:[#allocation2 + $0x5b8] sm:$0xff] }
  0x49   :  { %v261_v4 = vld [vmem:[#allocation2 + $0x668] sm:$0xff]  ;;  %v132_v6 = vld [vmem:[#allocation2 + $0x260] sm:$0xff]  ;;  %v52_v8 = vadd.f32 %v51_v61, %v50_v0  ;;  %460 = vmatpush2.msra.mxu1 %v264_v63  ;;  %390 = vmatprep.subr.mxu0 %v133_v3  ;;  %v107_v41 = vld [vmem:[#allocation2 + $0x198] sm:$0xff] }
  0x4a   :  { %v260_v7 = vld [vmem:[#allocation2 + $0x660] sm:$0xff]  ;;  %v129_v9 = vld [vmem:[#allocation2 + $0x248] sm:$0xff]  ;;  %461 = vmatprep.subr.mxu1 %v261_v4  ;;  %391 = vmatpush2.msra.mxu0 %v132_v6  ;;  %v238_v42 = vld [vmem:[#allocation2 + $0x5b0] sm:$0xff] }
  0x4b   :  { %v257_v10 = vld [vmem:[#allocation2 + $0x648] sm:$0xff]  ;;  %v128_v11 = vld [vmem:[#allocation2 + $0x240] sm:$0xff]  ;;  %v54_v13 = vadd.f32 %v53_v5, %v52_v8  ;;  %462 = vmatpush2.msra.mxu1 %v260_v7  ;;  %392 = vmatprep.subr.mxu0 %v129_v9  ;;  %v106_v43 = vld [vmem:[#allocation2 + $0x190] sm:$0xff] }
  0x4c   :  { %v256_v12 = vld [vmem:[#allocation2 + $0x640] sm:$0xff]  ;;  %v125_v15 = vld [vmem:[#allocation2 + $0x228] sm:$0xff]  ;;  %463 = vmatprep.subr.mxu1 %v257_v10  ;;  %393 = vmatpush2.msra.mxu0 %v128_v11  ;;  %v235_v44 = vld [vmem:[#allocation2 + $0x598] sm:$0xff] }
  0x4d   :  { %v253_v16 = vld [vmem:[#allocation2 + $0x628] sm:$0xff]  ;;  %v124_v17 = vld [vmem:[#allocation2 + $0x220] sm:$0xff]  ;;  %v55_v19 = vmul.f32 0.11111111, %v54_v13  ;;  %464 = vmatpush2.msra.mxu1 %v256_v12  ;;  %394 = vmatprep.subr.mxu0 %v125_v15  ;;  %v103_v45 = vld [vmem:[#allocation2 + $0x178] sm:$0xff] }
  0x4e   :  { %v252_v18 = vld [vmem:[#allocation2 + $0x620] sm:$0xff]  ;;  %v121_v20 = vld [vmem:[#allocation2 + $0x208] sm:$0xff]  ;;  %465 = vmatprep.subr.mxu1 %v253_v16  ;;  %395 = vmatpush2.msra.mxu0 %v124_v17  ;;  %v234_v46 = vld [vmem:[#allocation2 + $0x590] sm:$0xff] }
  0x4f   :  { %v249_v21 = vld [vmem:[#allocation2 + $0x608] sm:$0xff]  ;;  %v120_v22 = vld [vmem:[#allocation2 + $0x200] sm:$0xff]  ;;  %v3442_v23 = vrot.slane %v55_v19, %v3439_v14  ;;  %v313_v25 = vcombine.high %v55_v19, %v55_v19  ;;  %466 = vmatpush2.msra.mxu1 %v252_v18  ;;  %396 = vmatprep.subr.mxu0 %v121_v20  ;;  %v102_v47 = vld [vmem:[#allocation2 + $0x170] sm:$0xff] }
  0x50   :  { %v248_v24 = vld [vmem:[#allocation2 + $0x600] sm:$0xff]  ;;  %467 = vmatprep.subr.mxu1 %v249_v21  ;;  %397 = vmatpush2.msra.mxu0 %v120_v22  ;;  %v231_v48 = vld [vmem:[#allocation2 + $0x578] sm:$0xff]  ;;  %v226_v54 = vld [vmem:[#allocation2 + $0x550] sm:$0xff] }
  0x51   :  { %v3446_v28 = vcombine.high %v3442_v23, %v3442_v23  ;;  %v3449_v29 = vrot.slane %v313_v25, %v3439_v14  ;;  %468 = vmatpush2.msra.mxu1 %v248_v24  ;;  %476 = vmatprep.subr.mxu0 %v119_v27  ;;  %v99_v49 = vld [vmem:[#allocation2 + $0x158] sm:$0xff]  ;;  %v94_v55 = vld [vmem:[#allocation2 + $0x130] sm:$0xff] }
  0x52   :  { %547 = vmatprep.subr.mxu1 %v247_v30  ;;  %v95_v53 = vld [vmem:[#allocation2 + $0x138] sm:$0xff]  ;;  %v222_v58 = vld [vmem:[#allocation2 + $0x530] sm:$0xff] }
  0x53   :  { %398 = vmatprep.mubr.f32.mxu0 %v3446_v28  ;;  %v3454_v32 = vcombine.high %v3449_v29, %v3449_v29  ;;  %v223_v56 = vld [vmem:[#allocation2 + $0x538] sm:$0xff]  ;;  %v90_v59 = vld [vmem:[#allocation2 + $0x110] sm:$0xff] }
  0x54   :  { %399 = vmatmul.mubr.f32.vlgmr.msra.gmra.mxu0 %v3442_v23  ;;  %v91_v57 = vld [vmem:[#allocation2 + $0x118] sm:$0xff]  ;;  %v218_v62 = vld [vmem:[#allocation2 + $0x510] sm:$0xff] }
  0x55   :  { %469 = vmatprep.mubr.f32.mxu1 %v3454_v32  ;;  %477 = vmatpush1.msra.mxu0 %v118_v31  ;;  %v219_v60 = vld [vmem:[#allocation2 + $0x518] sm:$0xff]  ;;  %v86_v63 = vld [vmem:[#allocation2 + $0xf0] sm:$0xff] }
  0x56   :  { %470 = vmatmul.mubr.f32.vlgmr.msra.gmra.mxu1 %v3449_v29  ;;  %478 = vmatprep.subr.mxu0 %v115_v33  ;;  %v87_v61 = vld [vmem:[#allocation2 + $0xf8] sm:$0xff]  ;;  %v82_v3 = vld [vmem:[#allocation2 + $0xd0] sm:$0xff] }
  0x57   :  { %548 = vmatpush1.msra.mxu1 %v246_v34  ;;  %479 = vmatpush1.msra.mxu0 %v114_v35  ;;  %v215_v0 = vld [vmem:[#allocation2 + $0x4f8] sm:$0xff]  ;;  %v210_v6 = vld [vmem:[#allocation2 + $0x4d0] sm:$0xff] }
  0x58   :  { %549 = vmatprep.subr.mxu1 %v243_v36  ;;  %480 = vmatprep.subr.mxu0 %v111_v37  ;;  %v211_v4 = vld [vmem:[#allocation2 + $0x4d8] sm:$0xff]  ;;  %v78_v7 = vld [vmem:[#allocation2 + $0xb0] sm:$0xff] }
  0x59   :  { %550 = vmatpush1.msra.mxu1 %v242_v38  ;;  %481 = vmatpush1.msra.mxu0 %v110_v39  ;;  %v79_v5 = vld [vmem:[#allocation2 + $0xb8] sm:$0xff]  ;;  %v206_v10 = vld [vmem:[#allocation2 + $0x4b0] sm:$0xff] }
  0x5a   :  { %551 = vmatprep.subr.mxu1 %v239_v40  ;;  %482 = vmatprep.subr.mxu0 %v107_v41  ;;  %v207_v8 = vld [vmem:[#allocation2 + $0x4b8] sm:$0xff]  ;;  %v74_v11 = vld [vmem:[#allocation2 + $0x90] sm:$0xff] }
  0x5b   :  { %552 = vmatpush1.msra.mxu1 %v238_v42  ;;  %483 = vmatpush1.msra.mxu0 %v106_v43  ;;  %v75_v9 = vld [vmem:[#allocation2 + $0x98] sm:$0xff]  ;;  %v202_v15 = vld [vmem:[#allocation2 + $0x490] sm:$0xff] }
  0x5c   :  { %553 = vmatprep.subr.mxu1 %v235_v44  ;;  %484 = vmatprep.subr.mxu0 %v103_v45  ;;  %v203_v12 = vld [vmem:[#allocation2 + $0x498] sm:$0xff]  ;;  %v70_v16 = vld [vmem:[#allocation2 + $0x70] sm:$0xff] }
  0x5d   :  { %554 = vmatpush1.msra.mxu1 %v234_v46  ;;  %485 = vmatpush1.msra.mxu0 %v102_v47  ;;  %v71_v13 = vld [vmem:[#allocation2 + $0x78] sm:$0xff]  ;;  %v198_v19 = vld [vmem:[#allocation2 + $0x470] sm:$0xff] }
  0x5e   :  { %555 = vmatprep.subr.mxu1 %v231_v48  ;;  %486 = vmatprep.subr.mxu0 %v99_v49  ;;  %v199_v17 = vld [vmem:[#allocation2 + $0x478] sm:$0xff]  ;;  %v66_v20 = vld [vmem:[#allocation2 + $0x50] sm:$0xff] }
  0x5f   :  { %556 = vmatpush1.msra.mxu1 %v230_v50  ;;  %487 = vmatpush1.msra.mxu0 %v98_v51  ;;  %v67_v18 = vld [vmem:[#allocation2 + $0x58] sm:$0xff]  ;;  %v194_v24 = vld [vmem:[#allocation2 + $0x450] sm:$0xff] }
  0x60   :  { %557 = vmatprep.subr.mxu1 %v227_v52  ;;  %488 = vmatprep.subr.mxu0 %v95_v53  ;;  %v195_v21 = vld [vmem:[#allocation2 + $0x458] sm:$0xff]  ;;  %v62_v25 = vld [vmem:[#allocation2 + $0x30] sm:$0xff] }
  0x61   :  { %558 = vmatpush1.msra.mxu1 %v226_v54  ;;  %489 = vmatpush1.msra.mxu0 %v94_v55  ;;  %v63_v22 = vld [vmem:[#allocation2 + $0x38] sm:$0xff]  ;;  %v190_v31 = vld [vmem:[#allocation2 + $0x430] sm:$0xff] }
  0x62   :  { %559 = vmatprep.subr.mxu1 %v223_v56  ;;  %490 = vmatprep.subr.mxu0 %v91_v57  ;;  %v191_v27 = vld [vmem:[#allocation2 + $0x438] sm:$0xff]  ;;  %v58_v33 = vld [vmem:[#allocation2 + $0x10] sm:$0xff] }
  0x63   :  { %560 = vmatpush1.msra.mxu1 %v222_v58  ;;  %491 = vmatpush1.msra.mxu0 %v90_v59  ;;  %v59_v30 = vld [vmem:[#allocation2 + $0x18] sm:$0xff]  ;;  %v186_v36 = vld [vmem:[#allocation2 + $0x410] sm:$0xff] }
  0x64   :  { %561 = vmatprep.subr.mxu1 %v219_v60  ;;  %492 = vmatprep.subr.mxu0 %v87_v61  ;;  %v187_v34 = vld [vmem:[#allocation2 + $0x418] sm:$0xff]  ;;  %v182_v37 = vld [vmem:[#allocation2 + $0x3f0] sm:$0xff] }
  0x65   :  { %562 = vmatpush1.msra.mxu1 %v218_v62  ;;  %493 = vmatpush1.msra.mxu0 %v86_v63  ;;  %v183_v35 = vld [vmem:[#allocation2 + $0x3f8] sm:$0xff]  ;;  %v310_v40 = vld [vmem:[#allocation2 + $0x7f0] sm:$0xff] }
  0x66   :  { %563 = vmatprep.subr.mxu1 %v215_v0  ;;  %494 = vmatprep.subr.mxu0 %v83_v1  ;;  %v311_v38 = vld [vmem:[#allocation2 + $0x7f8] sm:$0xff]  ;;  %v178_v41 = vld [vmem:[#allocation2 + $0x3d0] sm:$0xff] }
  0x67   :  { %564 = vmatpush1.msra.mxu1 %v214_v2  ;;  %495 = vmatpush1.msra.mxu0 %v82_v3  ;;  %v179_v39 = vld [vmem:[#allocation2 + $0x3d8] sm:$0xff]  ;;  %v306_v44 = vld [vmem:[#allocation2 + $0x7d0] sm:$0xff] }
  0x68   :  { %565 = vmatprep.subr.mxu1 %v211_v4  ;;  %496 = vmatprep.subr.mxu0 %v79_v5  ;;  %v307_v42 = vld [vmem:[#allocation2 + $0x7d8] sm:$0xff]  ;;  %v174_v45 = vld [vmem:[#allocation2 + $0x3b0] sm:$0xff] }
  0x69   :  { %566 = vmatpush1.msra.mxu1 %v210_v6  ;;  %497 = vmatpush1.msra.mxu0 %v78_v7  ;;  %v175_v43 = vld [vmem:[#allocation2 + $0x3b8] sm:$0xff]  ;;  %v302_v48 = vld [vmem:[#allocation2 + $0x7b0] sm:$0xff] }
  0x6a   :  { %567 = vmatprep.subr.mxu1 %v207_v8  ;;  %498 = vmatprep.subr.mxu0 %v75_v9  ;;  %v303_v46 = vld [vmem:[#allocation2 + $0x7b8] sm:$0xff]  ;;  %v170_v49 = vld [vmem:[#allocation2 + $0x390] sm:$0xff] }
  0x6b   :  { %568 = vmatpush1.msra.mxu1 %v206_v10  ;;  %499 = vmatpush1.msra.mxu0 %v74_v11  ;;  %v171_v47 = vld [vmem:[#allocation2 + $0x398] sm:$0xff]  ;;  %v298_v52 = vld [vmem:[#allocation2 + $0x790] sm:$0xff] }
  0x6c   :  { %569 = vmatprep.subr.mxu1 %v203_v12  ;;  %500 = vmatprep.subr.mxu0 %v71_v13  ;;  %v299_v50 = vld [vmem:[#allocation2 + $0x798] sm:$0xff]  ;;  %v166_v53 = vld [vmem:[#allocation2 + $0x370] sm:$0xff] }
  0x6d   :  { %570 = vmatpush1.msra.mxu1 %v202_v15  ;;  %501 = vmatpush1.msra.mxu0 %v70_v16  ;;  %v167_v51 = vld [vmem:[#allocation2 + $0x378] sm:$0xff]  ;;  %v294_v56 = vld [vmem:[#allocation2 + $0x770] sm:$0xff] }
  0x6e   :  { %571 = vmatprep.subr.mxu1 %v199_v17  ;;  %502 = vmatprep.subr.mxu0 %v67_v18  ;;  %v295_v54 = vld [vmem:[#allocation2 + $0x778] sm:$0xff]  ;;  %v162_v57 = vld [vmem:[#allocation2 + $0x350] sm:$0xff] }
  0x6f   :  { %572 = vmatpush1.msra.mxu1 %v198_v19  ;;  %503 = vmatpush1.msra.mxu0 %v66_v20  ;;  %v163_v55 = vld [vmem:[#allocation2 + $0x358] sm:$0xff]  ;;  %v290_v60 = vld [vmem:[#allocation2 + $0x750] sm:$0xff] }
  0x70   :  { %573 = vmatprep.subr.mxu1 %v195_v21  ;;  %504 = vmatprep.subr.mxu0 %v63_v22  ;;  %v291_v58 = vld [vmem:[#allocation2 + $0x758] sm:$0xff]  ;;  %v158_v61 = vld [vmem:[#allocation2 + $0x330] sm:$0xff] }
  0x71   :  { %574 = vmatpush1.msra.mxu1 %v194_v24  ;;  %505 = vmatpush1.msra.mxu0 %v62_v25  ;;  %v159_v59 = vld [vmem:[#allocation2 + $0x338] sm:$0xff]  ;;  %v286_v0 = vld [vmem:[#allocation2 + $0x730] sm:$0xff] }
  0x72   :  { %575 = vmatprep.subr.mxu1 %v191_v27  ;;  %506 = vmatprep.subr.mxu0 %v59_v30  ;;  %v287_v62 = vld [vmem:[#allocation2 + $0x738] sm:$0xff]  ;;  %v154_v1 = vld [vmem:[#allocation2 + $0x310] sm:$0xff] }
  0x73   :  { %576 = vmatpush1.msra.mxu1 %v190_v31  ;;  %507 = vmatpush1.msra.mxu0 %v58_v33  ;;  %v155_v63 = vld [vmem:[#allocation2 + $0x318] sm:$0xff]  ;;  %v282_v4 = vld [vmem:[#allocation2 + $0x710] sm:$0xff] }
  0x74   :  { %577 = vmatprep.subr.mxu1 %v187_v34  ;;  %508 = vmatprep.subr.mxu0 %v183_v35  ;;  %v283_v2 = vld [vmem:[#allocation2 + $0x718] sm:$0xff]  ;;  %v150_v5 = vld [vmem:[#allocation2 + $0x2f0] sm:$0xff] }
  0x75   :  { %578 = vmatpush1.msra.mxu1 %v186_v36  ;;  %509 = vmatpush2.msra.mxu0 %v182_v37  ;;  %v151_v3 = vld [vmem:[#allocation2 + $0x2f8] sm:$0xff]  ;;  %v278_v8 = vld [vmem:[#allocation2 + $0x6f0] sm:$0xff] }
  0x76   :  { %579 = vmatprep.subr.mxu1 %v311_v38  ;;  %510 = vmatprep.subr.mxu0 %v179_v39  ;;  %v279_v6 = vld [vmem:[#allocation2 + $0x6f8] sm:$0xff]  ;;  %v146_v9 = vld [vmem:[#allocation2 + $0x2d0] sm:$0xff] }
  0x77   :  { %580 = vmatpush2.msra.mxu1 %v310_v40  ;;  %511 = vmatpush2.msra.mxu0 %v178_v41  ;;  %v147_v7 = vld [vmem:[#allocation2 + $0x2d8] sm:$0xff]  ;;  %v274_v12 = vld [vmem:[#allocation2 + $0x6d0] sm:$0xff] }
  0x78   :  { %581 = vmatprep.subr.mxu1 %v307_v42  ;;  %512 = vmatprep.subr.mxu0 %v175_v43  ;;  %v275_v10 = vld [vmem:[#allocation2 + $0x6d8] sm:$0xff]  ;;  %v142_v13 = vld [vmem:[#allocation2 + $0x2b0] sm:$0xff] }
  0x79   :  { %582 = vmatpush2.msra.mxu1 %v306_v44  ;;  %513 = vmatpush2.msra.mxu0 %v174_v45  ;;  %v143_v11 = vld [vmem:[#allocation2 + $0x2b8] sm:$0xff]  ;;  %v270_v17 = vld [vmem:[#allocation2 + $0x6b0] sm:$0xff]  ;;  %v634_v45 = vld [vmem:[%s4882_s3 + $0x60] sm:$0xff] }
  0x7a   :  { %583 = vmatprep.subr.mxu1 %v303_v46  ;;  %514 = vmatprep.subr.mxu0 %v171_v47  ;;  %v271_v15 = vld [vmem:[#allocation2 + $0x6b8] sm:$0xff]  ;;  %v138_v18 = vld [vmem:[#allocation2 + $0x290] sm:$0xff] }
  0x7b   :  { %584 = vmatpush2.msra.mxu1 %v302_v48  ;;  %515 = vmatpush2.msra.mxu0 %v170_v49  ;;  %v139_v16 = vld [vmem:[#allocation2 + $0x298] sm:$0xff]  ;;  %v266_v21 = vld [vmem:[#allocation2 + $0x690] sm:$0xff] }
  0x7c   :  { %585 = vmatprep.subr.mxu1 %v299_v50  ;;  %516 = vmatprep.subr.mxu0 %v167_v51  ;;  %v267_v19 = vld [vmem:[#allocation2 + $0x698] sm:$0xff]  ;;  %v134_v22 = vld [vmem:[#allocation2 + $0x270] sm:$0xff]  ;;  %v647_v50 = vld [vmem:[%s4882_s3 + $0xc8] sm:$0xff] }
  0x7d   :  { %586 = vmatpush2.msra.mxu1 %v298_v52  ;;  %517 = vmatpush2.msra.mxu0 %v166_v53  ;;  %v135_v20 = vld [vmem:[#allocation2 + $0x278] sm:$0xff]  ;;  %v262_v27 = vld [vmem:[#allocation2 + $0x670] sm:$0xff]  ;;  %v631_v51 = vld [vmem:[%s4882_s3 + $0x48] sm:$0xff] }
  0x7e   :  { %587 = vmatprep.subr.mxu1 %v295_v54  ;;  %518 = vmatprep.subr.mxu0 %v163_v55  ;;  %v263_v24 = vld [vmem:[#allocation2 + $0x678] sm:$0xff]  ;;  %v130_v30 = vld [vmem:[#allocation2 + $0x250] sm:$0xff]  ;;  %v646_v52 = vld [vmem:[%s4882_s3 + $0xc0] sm:$0xff] }
  0x7f   :  { %588 = vmatpush2.msra.mxu1 %v294_v56  ;;  %519 = vmatpush2.msra.mxu0 %v162_v57  ;;  %v131_v25 = vld [vmem:[#allocation2 + $0x258] sm:$0xff]  ;;  %v258_v34 = vld [vmem:[#allocation2 + $0x650] sm:$0xff]  ;;  %v630_v53 = vld [vmem:[%s4882_s3 + $0x40] sm:$0xff] }
  0x80   :  { %589 = vmatprep.subr.mxu1 %v291_v58  ;;  %520 = vmatprep.subr.mxu0 %v159_v59  ;;  %v259_v31 = vld [vmem:[#allocation2 + $0x658] sm:$0xff]  ;;  %v126_v35 = vld [vmem:[#allocation2 + $0x230] sm:$0xff]  ;;  %v643_v58 = vld [vmem:[%s4882_s3 + $0xa8] sm:$0xff] }
  0x81   :  { %590 = vmatpush2.msra.mxu1 %v290_v60  ;;  %521 = vmatpush2.msra.mxu0 %v158_v61  ;;  %v127_v33 = vld [vmem:[#allocation2 + $0x238] sm:$0xff]  ;;  %v254_v38 = vld [vmem:[#allocation2 + $0x630] sm:$0xff]  ;;  %v627_v59 = vld [vmem:[%s4882_s3 + $0x28] sm:$0xff] }
  0x82   :  { %591 = vmatprep.subr.mxu1 %v287_v62  ;;  %522 = vmatprep.subr.mxu0 %v155_v63  ;;  %v255_v36 = vld [vmem:[#allocation2 + $0x638] sm:$0xff]  ;;  %v122_v39 = vld [vmem:[#allocation2 + $0x210] sm:$0xff]  ;;  %v642_v60 = vld [vmem:[%s4882_s3 + $0xa0] sm:$0xff] }
  0x83   :  { %592 = vmatpush2.msra.mxu1 %v286_v0  ;;  %523 = vmatpush2.msra.mxu0 %v154_v1  ;;  %v123_v37 = vld [vmem:[#allocation2 + $0x218] sm:$0xff]  ;;  %v250_v41 = vld [vmem:[#allocation2 + $0x610] sm:$0xff]  ;;  %v626_v61 = vld [vmem:[%s4882_s3 + $0x20] sm:$0xff] }
  0x84   :  { %593 = vmatprep.subr.mxu1 %v283_v2  ;;  %524 = vmatprep.subr.mxu0 %v151_v3  ;;  %v251_v40 = vld [vmem:[#allocation2 + $0x618] sm:$0xff]  ;;  %v652_v44 = vld [vmem:[%s4882_s3 + $0xf0] sm:$0xff]  ;;  %v639_v2 = vld [vmem:[%s4882_s3 + $0x88] sm:$0xff] }
  0x85   :  { %594 = vmatpush2.msra.mxu1 %v282_v4  ;;  %525 = vmatpush2.msra.mxu0 %v150_v5  ;;  %v653_v42 = vld [vmem:[%s4882_s3 + $0xf8] sm:$0xff]  ;;  %v648_v48 = vld [vmem:[%s4882_s3 + $0xd0] sm:$0xff]  ;;  %v623_v3 = vld [vmem:[%s4882_s3 + $0x8] sm:$0xff] }
  0x86   :  { %595 = vmatprep.subr.mxu1 %v279_v6  ;;  %526 = vmatprep.subr.mxu0 %v147_v7  ;;  %v637_v43 = vld [vmem:[%s4882_s3 + $0x78] sm:$0xff]  ;;  %v632_v49 = vld [vmem:[%s4882_s3 + $0x50] sm:$0xff]  ;;  %v638_v4 = vld [vmem:[%s4882_s3 + $0x80] sm:$0xff] }
  0x87   :  { %596 = vmatpush2.msra.mxu1 %v278_v8  ;;  %527 = vmatpush2.msra.mxu0 %v146_v9  ;;  %v649_v46 = vld [vmem:[%s4882_s3 + $0xd8] sm:$0xff]  ;;  %v644_v56 = vld [vmem:[%s4882_s3 + $0xb0] sm:$0xff]  ;;  %v622_v5 = vld [vmem:[%s4882_s3] sm:$0xff] }
  0x88   :  { %597 = vmatprep.subr.mxu1 %v275_v10  ;;  %528 = vmatprep.subr.mxu0 %v143_v11  ;;  %v633_v47 = vld [vmem:[%s4882_s3 + $0x58] sm:$0xff]  ;;  %v628_v57 = vld [vmem:[%s4882_s3 + $0x30] sm:$0xff]  ;;  %v683_v11 = vld [vmem:[%s4882_s3 + $0x1e8] sm:$0xff] }
  0x89   :  { %598 = vmatpush2.msra.mxu1 %v274_v12  ;;  %529 = vmatpush2.msra.mxu0 %v142_v13  ;;  %v645_v54 = vld [vmem:[%s4882_s3 + $0xb8] sm:$0xff]  ;;  %v640_v0 = vld [vmem:[%s4882_s3 + $0x90] sm:$0xff]  ;;  %v667_v12 = vld [vmem:[%s4882_s3 + $0x168] sm:$0xff] }
  0x8a   :  { %599 = vmatprep.subr.mxu1 %v271_v15  ;;  %530 = vmatprep.subr.mxu0 %v139_v16  ;;  %v629_v55 = vld [vmem:[%s4882_s3 + $0x38] sm:$0xff]  ;;  %v624_v1 = vld [vmem:[%s4882_s3 + $0x10] sm:$0xff]  ;;  %v682_v13 = vld [vmem:[%s4882_s3 + $0x1e0] sm:$0xff] }
  0x8b   :  { %600 = vmatpush2.msra.mxu1 %v270_v17  ;;  %531 = vmatpush2.msra.mxu0 %v138_v18  ;;  %v641_v62 = vld [vmem:[%s4882_s3 + $0x98] sm:$0xff]  ;;  %v684_v9 = vld [vmem:[%s4882_s3 + $0x1f0] sm:$0xff]  ;;  %v666_v15 = vld [vmem:[%s4882_s3 + $0x160] sm:$0xff] }
  0x8c   :  { %601 = vmatprep.subr.mxu1 %v267_v19  ;;  %532 = vmatprep.subr.mxu0 %v135_v20  ;;  %v625_v63 = vld [vmem:[%s4882_s3 + $0x18] sm:$0xff]  ;;  %v668_v10 = vld [vmem:[%s4882_s3 + $0x170] sm:$0xff]  ;;  %v679_v20 = vld [vmem:[%s4882_s3 + $0x1c8] sm:$0xff] }
  0x8d   :  { %602 = vmatpush2.msra.mxu1 %v266_v21  ;;  %533 = vmatpush2.msra.mxu0 %v134_v22  ;;  %v3562_v6 = vld [vmem:[%s4881_s2 + $0xf8] sm:$0xff]  ;;  %v680_v18 = vld [vmem:[%s4882_s3 + $0x1d0] sm:$0xff]  ;;  %v663_v21 = vld [vmem:[%s4882_s3 + $0x148] sm:$0xff] }
  0x8e   :  { %603 = vmatprep.subr.mxu1 %v263_v24  ;;  %534 = vmatprep.subr.mxu0 %v131_v25  ;;  %v685_v7 = vld [vmem:[%s4882_s3 + $0x1f8] sm:$0xff]  ;;  %v664_v19 = vld [vmem:[%s4882_s3 + $0x150] sm:$0xff]  ;;  %v678_v22 = vld [vmem:[%s4882_s3 + $0x1c0] sm:$0xff] }
  0x8f   :  { %604 = vmatpush2.msra.mxu1 %v262_v27  ;;  %535 = vmatpush2.msra.mxu0 %v130_v30  ;;  %v669_v8 = vld [vmem:[%s4882_s3 + $0x178] sm:$0xff]  ;;  %v662_v24 = vld [vmem:[%s4882_s3 + $0x140] sm:$0xff]  ;;  %v676_v30 = vld [vmem:[%s4882_s3 + $0x1b0] sm:$0xff] }
  0x90   :  { %605 = vmatprep.subr.mxu1 %v259_v31  ;;  %536 = vmatprep.subr.mxu0 %v127_v33  ;;  %v681_v16 = vld [vmem:[%s4882_s3 + $0x1d8] sm:$0xff]  ;;  %v660_v31 = vld [vmem:[%s4882_s3 + $0x130] sm:$0xff]  ;;  %v675_v33 = vld [vmem:[%s4882_s3 + $0x1a8] sm:$0xff] }
  0x91   :  { %606 = vmatpush2.msra.mxu1 %v258_v34  ;;  %537 = vmatpush2.msra.mxu0 %v126_v35  ;;  %v665_v17 = vld [vmem:[%s4882_s3 + $0x158] sm:$0xff]  ;;  %v659_v34 = vld [vmem:[%s4882_s3 + $0x128] sm:$0xff]  ;;  %v674_v35 = vld [vmem:[%s4882_s3 + $0x1a0] sm:$0xff] }
  0x92   :  { %607 = vmatprep.subr.mxu1 %v255_v36  ;;  %538 = vmatprep.subr.mxu0 %v123_v37  ;;  %v677_v25 = vld [vmem:[%s4882_s3 + $0x1b8] sm:$0xff]  ;;  %v658_v36 = vld [vmem:[%s4882_s3 + $0x120] sm:$0xff] }
  0x93   :  { %608 = vmatpush2.msra.mxu1 %v254_v38  ;;  %539 = vmatpush2.msra.mxu0 %v122_v39  ;;  %v661_v27 = vld [vmem:[%s4882_s3 + $0x138] sm:$0xff]  ;;  %v672_v39 = vld [vmem:[%s4882_s3 + $0x190] sm:$0xff] }
  0x94   :  { %609 = vmatprep.subr.mxu1 %v251_v40  ;;  %540 = vmatprep.mubr.f32.mxu0 %v3446_v28  ;;  %v636_v28 = vld [vmem:[%s4882_s3 + $0x70] sm:$0xff]  ;;  %v673_v37 = vld [vmem:[%s4882_s3 + $0x198] sm:$0xff] }
  0x95   :  { %610 = vmatpush2.msra.mxu1 %v250_v41  ;;  %611 = vmatprep.mubr.f32.mxu1 %v3454_v32  ;;  %v651_v32 = vld [vmem:[%s4882_s3 + $0xe8] sm:$0xff]  ;;  %v657_v38 = vld [vmem:[%s4882_s3 + $0x118] sm:$0xff]  ;;  %v656_v40 = vld [vmem:[%s4882_s3 + $0x110] sm:$0xff] }
  0x96   :  { %541 = vmatmul.mubr.f32.vlgmr.msra.gmra.mxu0 %v3442_v23  ;;  %612 = vmatmul.mubr.f32.vlgmr.msra.gmra.mxu1 %v3449_v29  ;;  %v635_v23 = vld [vmem:[%s4882_s3 + $0x68] sm:$0xff]  ;;  %v650_v29 = vld [vmem:[%s4882_s3 + $0xe0] sm:$0xff] }
  0x97   :  { %2497 = vmatprep.subr.mxu0 %v653_v42  ;;  %2532 = vmatprep.subr.mxu1 %v685_v7  ;;  %v671_v41 = vld [vmem:[%s4882_s3 + $0x188] sm:$0xff] }
  0x98   :  { %2498 = vmatpush3.msra.mxu0 %v637_v43  ;;  %2533 = vmatpush3.msra.mxu1 %v669_v8  ;;  %v655_v42 = vld [vmem:[%s4882_s3 + $0x108] sm:$0xff]  ;;  %v670_v43 = vld [vmem:[%s4882_s3 + $0x180] sm:$0xff] }
  0x99   :  { %2499 = vmatprep.subr.mxu0 %v652_v44  ;;  %2534 = vmatprep.subr.mxu1 %v684_v9  ;;  %v654_v44 = vld [vmem:[%s4882_s3 + $0x100] sm:$0xff]  ;;  %v3788_v7 = vld [vmem:[%s4881_s2 + $0xa8] sm:$0xff] }
  0x9a   :  { %2500 = vmatpush3.msra.mxu0 %v636_v28  ;;  %2535 = vmatpush3.msra.mxu1 %v668_v10  ;;  %v3664_v28 = vld [vmem:[%s4881_s2 + $0x1f8] sm:$0xff]  ;;  %v3794_v8 = vld [vmem:[%s4881_s2 + $0x28] sm:$0xff]  ;;  %v3800_v9 = vld [vmem:[%s4881_s2 + $0xa0] sm:$0xff] }
  0x9b   :  { %2501 = vmatprep.subr.mxu0 %v651_v32  ;;  %2536 = vmatprep.subr.mxu1 %v683_v11  ;;  %4916 = vst [vmem:[#allocation10_spill] sm:$0xff] %v3794_v8  ;;  %4917 = vst [vmem:[#allocation11_spill] sm:$0xff] %v3800_v9  ;;  %v3806_v10 = vld [vmem:[%s4881_s2 + $0x20] sm:$0xff]  ;;  %v3812_v11 = vld [vmem:[%s4881_s2 + $0x98] sm:$0xff] }
  0x9c   :  { %2502 = vmatpush3.msra.mxu0 %v635_v23  ;;  %2537 = vmatpush3.msra.mxu1 %v667_v12  ;;  %4918 = vst [vmem:[#allocation12_spill] sm:$0xff] %v3806_v10  ;;  %v3818_v12 = vld [vmem:[%s4881_s2 + $0x18] sm:$0xff] }
  0x9d   :  { %2503 = vmatprep.subr.mxu0 %v650_v29  ;;  %2538 = vmatprep.subr.mxu1 %v682_v13  ;;  %v3824_v13 = vld [vmem:[%s4881_s2 + $0x90] sm:$0xff] }
  0x9e   :  { %2504 = vmatpush3.msra.mxu0 %v634_v45  ;;  %2539 = vmatpush3.msra.mxu1 %v666_v15  ;;  %v3669_v45 = vrot.slane %v3412_v26, %v3439_v14  ;;  %v3686_v26 = vld [vmem:[%s4881_s2 + $0x70] sm:$0xff] }
  0x9f   :  { %2505 = vmatprep.subr.mxu0 %v649_v46  ;;  %2540 = vmatprep.subr.mxu1 %v681_v16  ;;  %v3830_v15 = vld [vmem:[%s4881_s2 + $0x10] sm:$0xff]  ;;  %v3836_v16 = vld [vmem:[%s4881_s2 + $0x88] sm:$0xff] }
  0xa0   :  { %2506 = vmatpush3.msra.mxu0 %v633_v47  ;;  %2541 = vmatpush3.msra.mxu1 %v665_v17  ;;  %v3841_v17 = vld [vmem:[%s4879_s0 + $0x8] sm:$0xff] }
  0xa1   :  { %2507 = vmatprep.subr.mxu0 %v648_v48  ;;  %2542 = vmatprep.subr.mxu1 %v680_v18  ;;  %v1080_v18 = vrot.slane %v3841_v17, %v3439_v14 }
  0xa2   :  { %2508 = vmatpush3.msra.mxu0 %v632_v49  ;;  %2543 = vmatpush3.msra.mxu1 %v664_v19  ;;  %v3849_v19 = vld [vmem:[%s4881_s2 + $0x8] sm:$0xff] }
  0xa3   :  { %2509 = vmatprep.subr.mxu0 %v647_v50  ;;  %2544 = vmatprep.subr.mxu1 %v679_v20  ;;  %v914_v50 = vcombine.high %v3669_v45, %v3669_v45  ;;  %v3855_v20 = vld [vmem:[%s4881_s2 + $0x80] sm:$0xff] }
  0xa4   :  { %2510 = vmatpush3.msra.mxu0 %v631_v51  ;;  %2545 = vmatpush3.msra.mxu1 %v663_v21  ;;  %v3861_v21 = vld [vmem:[%s4881_s2] sm:$0xff] }
  0xa5   :  { %2511 = vmatprep.subr.mxu0 %v646_v52  ;;  %2546 = vmatprep.subr.mxu1 %v678_v22  ;;  %v3676_v52 = vld [vmem:[%s4881_s2 + $0x78] sm:$0xff]  ;;  %v1088_v22 = vcombine.high %v1080_v18, %v1080_v18 }
  0xa6   :  { %2512 = vmatpush3.msra.mxu0 %v630_v53  ;;  %2547 = vmatpush3.msra.mxu1 %v662_v24  ;;  %v3681_v53 = vld [vmem:[%s4881_s2 + $0xf0] sm:$0xff] }
  0xa7   :  { %2513 = vmatprep.subr.mxu0 %v645_v54  ;;  %2548 = vmatprep.subr.mxu1 %v677_v25  ;;  %v3692_v54 = vld [vmem:[%s4881_s2 + $0xe8] sm:$0xff] }
  0xa8   :  { %2514 = vmatpush3.msra.mxu0 %v629_v55  ;;  %2549 = vmatpush3.msra.mxu1 %v661_v27  ;;  %v3698_v55 = vld [vmem:[%s4881_s2 + $0x68] sm:$0xff] }
  0xa9   :  { %2515 = vmatprep.subr.mxu0 %v644_v56  ;;  %2550 = vmatprep.subr.mxu1 %v676_v30  ;;  %v3704_v56 = vld [vmem:[%s4881_s2 + $0xe0] sm:$0xff] }
  0xaa   :  { %2516 = vmatpush3.msra.mxu0 %v628_v57  ;;  %2551 = vmatpush3.msra.mxu1 %v660_v31  ;;  %v3710_v57 = vld [vmem:[%s4881_s2 + $0x60] sm:$0xff] }
  0xab   :  { %2517 = vmatprep.subr.mxu0 %v643_v58  ;;  %2552 = vmatprep.subr.mxu1 %v675_v33  ;;  %v3716_v58 = vld [vmem:[%s4881_s2 + $0xd8] sm:$0xff] }
  0xac   :  { %2518 = vmatpush3.msra.mxu0 %v627_v59  ;;  %2553 = vmatpush3.msra.mxu1 %v659_v34  ;;  %v3722_v59 = vld [vmem:[%s4881_s2 + $0x58] sm:$0xff] }
  0xad   :  { %2519 = vmatprep.subr.mxu0 %v642_v60  ;;  %2554 = vmatprep.subr.mxu1 %v674_v35  ;;  %v3728_v60 = vld [vmem:[%s4881_s2 + $0xd0] sm:$0xff] }
  0xae   :  { %2520 = vmatpush3.msra.mxu0 %v626_v61  ;;  %2555 = vmatpush3.msra.mxu1 %v658_v36  ;;  %v3734_v61 = vld [vmem:[%s4881_s2 + $0x50] sm:$0xff]  ;;  %v3901_v36 = vld [vmem:[%s4881_s2 + $0x178] sm:$0xff] }
  0xaf   :  { %2521 = vmatprep.subr.mxu0 %v641_v62  ;;  %2556 = vmatprep.subr.mxu1 %v673_v37  ;;  %v3740_v62 = vld [vmem:[%s4881_s2 + $0xc8] sm:$0xff]  ;;  %v3907_v37 = vld [vmem:[%s4881_s2 + $0x1f0] sm:$0xff] }
  0xb0   :  { %2522 = vmatpush3.msra.mxu0 %v625_v63  ;;  %2557 = vmatpush3.msra.mxu1 %v657_v38  ;;  %v3746_v63 = vld [vmem:[%s4881_s2 + $0x48] sm:$0xff]  ;;  %v3913_v38 = vld [vmem:[%s4881_s2 + $0x170] sm:$0xff] }
  0xb1   :  { %2523 = vmatprep.subr.mxu0 %v640_v0  ;;  %2558 = vmatprep.subr.mxu1 %v672_v39  ;;  %v3752_v0 = vld [vmem:[%s4881_s2 + $0xc0] sm:$0xff]  ;;  %v3919_v39 = vld [vmem:[%s4881_s2 + $0x1e8] sm:$0xff] }
  0xb2   :  { %2524 = vmatpush3.msra.mxu0 %v624_v1  ;;  %2559 = vmatpush3.msra.mxu1 %v656_v40  ;;  %v3758_v1 = vld [vmem:[%s4881_s2 + $0x40] sm:$0xff]  ;;  %v3926_v40 = vld [vmem:[%s4881_s2 + $0x168] sm:$0xff] }
  0xb3   :  { %2525 = vmatprep.subr.mxu0 %v639_v2  ;;  %2560 = vmatprep.subr.mxu1 %v671_v41  ;;  %v3764_v2 = vld [vmem:[%s4881_s2 + $0xb8] sm:$0xff]  ;;  %v3933_v41 = vld [vmem:[%s4881_s2 + $0x1e0] sm:$0xff] }
  0xb4   :  { %2526 = vmatpush3.msra.mxu0 %v623_v3  ;;  %2561 = vmatpush3.msra.mxu1 %v655_v42  ;;  %v3770_v3 = vld [vmem:[%s4881_s2 + $0x38] sm:$0xff]  ;;  %v3940_v42 = vld [vmem:[%s4881_s2 + $0x160] sm:$0xff] }
  0xb5   :  { %2527 = vmatprep.subr.mxu0 %v638_v4  ;;  %2562 = vmatprep.subr.mxu1 %v670_v43  ;;  %v3776_v4 = vld [vmem:[%s4881_s2 + $0xb0] sm:$0xff]  ;;  %v3947_v43 = vld [vmem:[%s4881_s2 + $0x1d8] sm:$0xff] }
  0xb6   :  { %2528 = vmatpush3.msra.mxu0 %v622_v5  ;;  %2563 = vmatpush3.msra.mxu1 %v654_v44  ;;  %4914 = vst [vmem:[#allocation8_spill] sm:$0xff] %v3776_v4  ;;  %v3782_v5 = vld [vmem:[%s4881_s2 + $0x30] sm:$0xff]  ;;  %v3954_v44 = vld [vmem:[%s4881_s2 + $0x158] sm:$0xff] }
  0xb7   :  { %2567 = vmatprep.subr.mxu0 %v3562_v6  ;;  %2602 = vmatprep.subr.mxu1 %v3664_v28  ;;  %4915 = vst [vmem:[#allocation9_spill] sm:$0xff] %v3782_v5 }
 0x114   :  { %v400_v32 = vpop.f32.mrf.mxu0 }
 0x116   :  { %v471_v23 = vpop.f32.mrf.mxu1  ;;  %v402_v29 = vpop.f32.mrf.mxu0 }
 0x117   :  { %v472_v46 = vadd.f32 %v471_v23, %v400_v32  ;;  %v3961_v32 = vld [vmem:[%s4881_s2 + $0x1d0] sm:$0xff] }
 0x118   :  { %v473_v47 = vpop.f32.mrf.mxu1  ;;  %v3968_v23 = vld [vmem:[%s4881_s2 + $0x150] sm:$0xff] }
 0x119   :  { %v474_v48 = vadd.f32 %v473_v47, %v402_v29  ;;  %v618_v51 = vmax.f32 %v472_v46, 0.0  ;;  %v3975_v29 = vld [vmem:[%s4881_s2 + $0x1c8] sm:$0xff]  ;;  %v3989_v46 = vld [vmem:[%s4881_s2 + $0x1c0] sm:$0xff] }
 0x11a   :  { %v3996_v47 = vld [vmem:[%s4881_s2 + $0x140] sm:$0xff] }
 0x11b   :  { %v619_v49 = vmax.f32 %v474_v48, 0.0  ;;  %v4003_v48 = vld [vmem:[%s4881_s2 + $0x1b8] sm:$0xff] }
 0x11d   :  { %757 = vmatprep.mubr.f32.mxu0 %v619_v49  ;;  %v4010_v49 = vld [vmem:[%s4881_s2 + $0x138] sm:$0xff] }
 0x11e   :  { %758 = vmatmul.mubr.f32.vlgmr.msra.gmra.mxu0 %v618_v51  ;;  %v4024_v51 = vld [vmem:[%s4881_s2 + $0x130] sm:$0xff] }
 0x11f   :  { %2568 = vmatpush3.msra.mxu0 %v3676_v52  ;;  %984 = vmatprep.mubr.f32.mxu0 %v914_v50  ;;  %v4017_v50 = vld [vmem:[%s4881_s2 + $0x1b0] sm:$0xff] }
 0x120   :  { %2569 = vmatprep.subr.mxu0 %v3681_v53  ;;  %4919 = vst [vmem:[#allocation13_spill] sm:$0xff] %v4017_v50 }
 0x121   :  { %2570 = vmatpush3.msra.mxu0 %v3686_v26 }
 0x122   :  { %2571 = vmatprep.subr.mxu0 %v3692_v54 }
 0x123   :  { %2572 = vmatpush3.msra.mxu0 %v3698_v55 }
 0x124   :  { %2573 = vmatprep.subr.mxu0 %v3704_v56 }
 0x125   :  { %2574 = vmatpush3.msra.mxu0 %v3710_v57 }
 0x126   :  { %2575 = vmatprep.subr.mxu0 %v3716_v58 }
 0x127   :  { %2576 = vmatpush3.msra.mxu0 %v3722_v59 }
 0x128   :  { %2577 = vmatprep.subr.mxu0 %v3728_v60 }
 0x129   :  { %2578 = vmatpush3.msra.mxu0 %v3734_v61 }
 0x12a   :  { %2579 = vmatprep.subr.mxu0 %v3740_v62 }
 0x12b   :  { %2580 = vmatpush3.msra.mxu0 %v3746_v63 }
 0x12c   :  { %2581 = vmatprep.subr.mxu0 %v3752_v0 }
 0x12d   :  { %2582 = vmatpush3.msra.mxu0 %v3758_v1 }
 0x12e   :  { %2583 = vmatprep.subr.mxu0 %v3764_v2 }
 0x12f   :  { %2584 = vmatpush3.msra.mxu0 %v3770_v3 }
 0x130   :  { %2585 = vmatprep.subr.mxu0 %v3776_v4 }
 0x131   :  { %2586 = vmatpush3.msra.mxu0 %v3782_v5 }
 0x132   :  { %2587 = vmatprep.subr.mxu0 %v3788_v7 }
 0x133   :  { %2588 = vmatpush3.msra.mxu0 %v3794_v8 }
 0x134   :  { %2589 = vmatprep.subr.mxu0 %v3800_v9 }
 0x135   :  { %2590 = vmatpush3.msra.mxu0 %v3806_v10 }
 0x136   :  { %2591 = vmatprep.subr.mxu0 %v3812_v11 }
 0x137   :  { %2592 = vmatpush3.msra.mxu0 %v3818_v12 }
 0x138   :  { %2593 = vmatprep.subr.mxu0 %v3824_v13 }
 0x139   :  { %2594 = vmatpush3.msra.mxu0 %v3830_v15 }
 0x13a   :  { %2595 = vmatprep.subr.mxu0 %v3836_v16 }
 0x13b   :  { %2596 = vmatpush3.msra.mxu0 %v3849_v19 }
 0x13c   :  { %2597 = vmatprep.subr.mxu0 %v3855_v20 }
 0x13d   :  { %2598 = vmatpush3.msra.mxu0 %v3861_v21 }
 0x13e   :  { %2637 = vmatprep.subr.mxu0 %v3562_v6  ;;  %985 = vmatmul.mubr.f32.vlgmr.msra.gmra.mxu0 %v3669_v45  ;;  %v3982_v45 = vld [vmem:[%s4881_s2 + $0x148] sm:$0xff] }
 0x13f   :  { %2638 = vmatpush3.msra.mxu0 %v3676_v52  ;;  %1158 = vmatprep.mubr.f32.mxu0 %v1088_v22  ;;  %v4038_v22 = vld [vmem:[%s4881_s2 + $0x128] sm:$0xff] }
 0x140   :  { %2639 = vmatprep.subr.mxu0 %v3681_v53 }
 0x141   :  { %2640 = vmatpush3.msra.mxu0 %v3686_v26 }
 0x142   :  { %2641 = vmatprep.subr.mxu0 %v3692_v54 }
 0x143   :  { %2642 = vmatpush3.msra.mxu0 %v3698_v55 }
 0x144   :  { %2643 = vmatprep.subr.mxu0 %v3704_v56 }
 0x145   :  { %2644 = vmatpush3.msra.mxu0 %v3710_v57 }
 0x146   :  { %2645 = vmatprep.subr.mxu0 %v3716_v58 }
 0x147   :  { %2646 = vmatpush3.msra.mxu0 %v3722_v59 }
 0x148   :  { %2647 = vmatprep.subr.mxu0 %v3728_v60 }
 0x149   :  { %2648 = vmatpush3.msra.mxu0 %v3734_v61 }
 0x14a   :  { %2649 = vmatprep.subr.mxu0 %v3740_v62 }
 0x14b   :  { %2650 = vmatpush3.msra.mxu0 %v3746_v63 }
 0x14c   :  { %2651 = vmatprep.subr.mxu0 %v3752_v0 }
 0x14d   :  { %2652 = vmatpush3.msra.mxu0 %v3758_v1 }
 0x14e   :  { %2653 = vmatprep.subr.mxu0 %v3764_v2 }
 0x14f   :  { %2654 = vmatpush3.msra.mxu0 %v3770_v3 }
 0x150   :  { %2655 = vmatprep.subr.mxu0 %v3776_v4 }
 0x151   :  { %2656 = vmatpush3.msra.mxu0 %v3782_v5 }
 0x152   :  { %2657 = vmatprep.subr.mxu0 %v3788_v7 }
 0x153   :  { %2658 = vmatpush3.msra.mxu0 %v3794_v8 }
 0x154   :  { %2659 = vmatprep.subr.mxu0 %v3800_v9 }
 0x155   :  { %2660 = vmatpush3.msra.mxu0 %v3806_v10 }
 0x156   :  { %2661 = vmatprep.subr.mxu0 %v3812_v11  ;;  %v542_v24 = vpop.f32.mrf.mxu0  ;;  %v613_v25 = vpop.f32.mrf.mxu1 }
 0x157   :  { %2662 = vmatpush3.msra.mxu0 %v3818_v12  ;;  %v614_v27 = vadd.f32 %v613_v25, %v542_v24  ;;  %v4045_v24 = vld [vmem:[%s4881_s2 + $0x1a0] sm:$0xff] }
 0x158   :  { %2663 = vmatprep.subr.mxu0 %v3824_v13  ;;  %v544_v30 = vpop.f32.mrf.mxu0  ;;  %v615_v31 = vpop.f32.mrf.mxu1  ;;  %v4052_v25 = vld [vmem:[%s4881_s2 + $0x120] sm:$0xff] }
 0x159   :  { %v616_v33 = vadd.f32 %v615_v31, %v544_v30  ;;  %2664 = vmatpush3.msra.mxu0 %v3830_v15  ;;  %v620_v35 = vmax.f32 %v614_v27, 0.0  ;;  %4921 = vst [vmem:[#allocation15_spill] sm:$0xff] %v4052_v25  ;;  %v3250_v27 = vld [vmem:[%s4879_s0] sm:$0xff]  ;;  %v4062_v31 = vld [vmem:[%s4881_s2 + $0x198] sm:$0xff] }
 0x15a   :  { %2665 = vmatprep.subr.mxu0 %v3836_v16  ;;  %v899_v30 = vcombine.high %v3250_v27, %v3250_v27  ;;  %4922 = vst [vmem:[#allocation16_spill] sm:$0xff] %v4062_v31 }
 0x15b   :  { %v621_v34 = vmax.f32 %v616_v33, 0.0  ;;  %2666 = vmatpush3.msra.mxu0 %v3849_v19  ;;  %v4069_v33 = vld [vmem:[%s4881_s2 + $0x118] sm:$0xff] }
 0x15c   :  { %2667 = vmatprep.subr.mxu0 %v3855_v20  ;;  %4923 = vst [vmem:[#allocation17_spill] sm:$0xff] %v4069_v33  ;;  %v913_v27 = vrot.slane %v899_v30, %v3439_v14  ;;  %v4105_v30 = vld [vmem:[%s4881_s2 + $0x108] sm:$0xff] }
 0x15d   :  { %2668 = vmatpush3.msra.mxu0 %v3861_v21  ;;  %827 = vmatprep.mubr.f32.mxu1 %v621_v34  ;;  %v4076_v34 = vld [vmem:[%s4881_s2 + $0x190] sm:$0xff] }
 0x15e   :  { %2707 = vmatprep.subr.mxu0 %v3562_v6  ;;  %828 = vmatmul.mubr.f32.vlgmr.msra.gmra.mxu1 %v620_v35  ;;  %4924 = vst [vmem:[#allocation18_spill] sm:$0xff] %v4076_v34  ;;  %v4083_v35 = vld [vmem:[%s4881_s2 + $0x110] sm:$0xff] }
 0x15f   :  { %2603 = vmatpush3.msra.mxu1 %v3901_v36  ;;  %1159 = vmatmul.mubr.f32.vlgmr.msra.gmra.mxu0 %v1080_v18  ;;  %v4031_v18 = vld [vmem:[%s4881_s2 + $0x1a8] sm:$0xff]  ;;  %4925 = vst [vmem:[#allocation19_spill] sm:$0xff] %v4083_v35 }
 0x160   :  { %2708 = vmatpush3.msra.mxu0 %v3676_v52  ;;  %2604 = vmatprep.subr.mxu1 %v3907_v37  ;;  %4920 = vst [vmem:[#allocation14_spill] sm:$0xff] %v4031_v18 }
 0x161   :  { %2709 = vmatprep.subr.mxu0 %v3681_v53  ;;  %2605 = vmatpush3.msra.mxu1 %v3913_v38 }
 0x162   :  { %2710 = vmatpush3.msra.mxu0 %v3686_v26  ;;  %2606 = vmatprep.subr.mxu1 %v3919_v39 }
 0x163   :  { %2711 = vmatprep.subr.mxu0 %v3692_v54  ;;  %2607 = vmatpush3.msra.mxu1 %v3926_v40 }
 0x164   :  { %2712 = vmatpush3.msra.mxu0 %v3698_v55  ;;  %2608 = vmatprep.subr.mxu1 %v3933_v41 }
 0x165   :  { %2713 = vmatprep.subr.mxu0 %v3704_v56  ;;  %2609 = vmatpush3.msra.mxu1 %v3940_v42 }
 0x166   :  { %2714 = vmatpush3.msra.mxu0 %v3710_v57  ;;  %2610 = vmatprep.subr.mxu1 %v3947_v43 }
 0x167   :  { %2715 = vmatprep.subr.mxu0 %v3716_v58  ;;  %2611 = vmatpush3.msra.mxu1 %v3954_v44 }
 0x168   :  { %2716 = vmatpush3.msra.mxu0 %v3722_v59  ;;  %2612 = vmatprep.subr.mxu1 %v3961_v32 }
 0x169   :  { %2717 = vmatprep.subr.mxu0 %v3728_v60  ;;  %2613 = vmatpush3.msra.mxu1 %v3968_v23 }
 0x16a   :  { %2718 = vmatpush3.msra.mxu0 %v3734_v61  ;;  %2614 = vmatprep.subr.mxu1 %v3975_v29 }
 0x16b   :  { %2719 = vmatprep.subr.mxu0 %v3740_v62  ;;  %2615 = vmatpush3.msra.mxu1 %v3982_v45 }
 0x16c   :  { %2720 = vmatpush3.msra.mxu0 %v3746_v63  ;;  %2616 = vmatprep.subr.mxu1 %v3989_v46 }
 0x16d   :  { %2721 = vmatprep.subr.mxu0 %v3752_v0  ;;  %2617 = vmatpush3.msra.mxu1 %v3996_v47 }
 0x16e   :  { %2722 = vmatpush3.msra.mxu0 %v3758_v1  ;;  %2618 = vmatprep.subr.mxu1 %v4003_v48 }
 0x16f   :  { %2723 = vmatprep.subr.mxu0 %v3764_v2  ;;  %2619 = vmatpush3.msra.mxu1 %v4010_v49 }
 0x170   :  { %2724 = vmatpush3.msra.mxu0 %v3770_v3  ;;  %2620 = vmatprep.subr.mxu1 %v4017_v50 }
 0x171   :  { %2725 = vmatprep.subr.mxu0 %v3776_v4  ;;  %2621 = vmatpush3.msra.mxu1 %v4024_v51 }
 0x172   :  { %2726 = vmatpush3.msra.mxu0 %v3782_v5  ;;  %2622 = vmatprep.subr.mxu1 %v4031_v18 }
 0x173   :  { %2727 = vmatprep.subr.mxu0 %v3788_v7  ;;  %2623 = vmatpush3.msra.mxu1 %v4038_v22 }
 0x174   :  { %2728 = vmatpush3.msra.mxu0 %v3794_v8  ;;  %2624 = vmatprep.subr.mxu1 %v4045_v24 }
 0x175   :  { %2729 = vmatprep.subr.mxu0 %v3800_v9  ;;  %2625 = vmatpush3.msra.mxu1 %v4052_v25  ;;  %v4091_v25 = vld [vmem:[%s4881_s2 + $0x188] sm:$0xff] }
 0x176   :  { %2730 = vmatpush3.msra.mxu0 %v3806_v10  ;;  %2626 = vmatprep.subr.mxu1 %v4062_v31  ;;  %v4096_v31 = vld [vmem:[%s4879_s0 + $0x10] sm:$0xff] }
 0x177   :  { %2731 = vmatprep.subr.mxu0 %v3812_v11  ;;  %2627 = vmatpush3.msra.mxu1 %v4069_v33  ;;  %4926 = vst [vmem:[#allocation20_spill] sm:$0xff] %v4096_v31  ;;  %v1247_v10 = vrot.slane %v4096_v31, %v3439_v14  ;;  %v4112_v33 = vld [vmem:[%s4881_s2 + $0x180] sm:$0xff] }
 0x178   :  { %2732 = vmatpush3.msra.mxu0 %v3818_v12  ;;  %2628 = vmatprep.subr.mxu1 %v4076_v34  ;;  %v4119_v31 = vld [vmem:[%s4881_s2 + $0x100] sm:$0xff]  ;;  %v915_v34 = vcombine.high %v913_v27, %v913_v27 }
 0x179   :  { %2733 = vmatprep.subr.mxu0 %v3824_v13  ;;  %2629 = vmatpush3.msra.mxu1 %v4083_v35  ;;  %v1255_v35 = vcombine.high %v1247_v10, %v1247_v10 }
 0x17a   :  { %2734 = vmatpush3.msra.mxu0 %v3830_v15  ;;  %2630 = vmatprep.subr.mxu1 %v4091_v25 }
 0x17b   :  { %2735 = vmatprep.subr.mxu0 %v3836_v16  ;;  %2631 = vmatpush3.msra.mxu1 %v4105_v30 }
 0x17c   :  { %2736 = vmatpush3.msra.mxu0 %v3849_v19  ;;  %2632 = vmatprep.subr.mxu1 %v4112_v33 }
 0x17d   :  { %2737 = vmatprep.subr.mxu0 %v3855_v20  ;;  %2633 = vmatpush3.msra.mxu1 %v4119_v31 }
 0x17e   :  { %1054 = vmatprep.mubr.f32.mxu1 %v915_v34  ;;  %2738 = vmatpush3.msra.mxu0 %v3861_v21  ;;  %v4927_v34 = vld [vmem:[#allocation15_spill] sm:$0xff] }
 0x17f   :  { %1325 = vmatprep.mubr.f32.mxu0 %v1255_v35  ;;  %1055 = vmatmul.mubr.f32.vlgmr.msra.gmra.mxu1 %v913_v27  ;;  %v4928_v35 = vld [vmem:[#allocation12_spill] sm:$0xff] }
 0x180   :  { %2672 = vmatprep.subr.mxu1 %v3664_v28  ;;  %1326 = vmatmul.mubr.f32.vlgmr.msra.gmra.mxu0 %v1247_v10  ;;  %v1073_v10 = vcombine.high %v3841_v17, %v3841_v17  ;;  %v4929_v27 = vld [vmem:[#allocation16_spill] sm:$0xff]  ;;  %v4930_v17 = vld [vmem:[#allocation17_spill] sm:$0xff] }
 0x181   :  { %2777 = vmatprep.subr.mxu0 %v3562_v6  ;;  %2673 = vmatpush3.msra.mxu1 %v3901_v36 }
 0x182   :  { %2778 = vmatpush3.msra.mxu0 %v3676_v52  ;;  %2674 = vmatprep.subr.mxu1 %v3907_v37 }
 0x183   :  { %2779 = vmatprep.subr.mxu0 %v3681_v53  ;;  %2675 = vmatpush3.msra.mxu1 %v3913_v38 }
 0x184   :  { %2780 = vmatpush3.msra.mxu0 %v3686_v26  ;;  %2676 = vmatprep.subr.mxu1 %v3919_v39 }
 0x185   :  { %2781 = vmatprep.subr.mxu0 %v3692_v54  ;;  %2677 = vmatpush3.msra.mxu1 %v3926_v40 }
 0x186   :  { %2782 = vmatpush3.msra.mxu0 %v3698_v55  ;;  %2678 = vmatprep.subr.mxu1 %v3933_v41 }
 0x187   :  { %2783 = vmatprep.subr.mxu0 %v3704_v56  ;;  %2679 = vmatpush3.msra.mxu1 %v3940_v42 }
 0x188   :  { %2784 = vmatpush3.msra.mxu0 %v3710_v57  ;;  %2680 = vmatprep.subr.mxu1 %v3947_v43 }
 0x189   :  { %2785 = vmatprep.subr.mxu0 %v3716_v58  ;;  %2681 = vmatpush3.msra.mxu1 %v3954_v44 }
 0x18a   :  { %2786 = vmatpush3.msra.mxu0 %v3722_v59  ;;  %2682 = vmatprep.subr.mxu1 %v3961_v32 }
 0x18b   :  { %2787 = vmatprep.subr.mxu0 %v3728_v60  ;;  %2683 = vmatpush3.msra.mxu1 %v3968_v23 }
 0x18c   :  { %2788 = vmatpush3.msra.mxu0 %v3734_v61  ;;  %2684 = vmatprep.subr.mxu1 %v3975_v29 }
 0x18d   :  { %2789 = vmatprep.subr.mxu0 %v3740_v62  ;;  %2685 = vmatpush3.msra.mxu1 %v3982_v45 }
 0x18e   :  { %2790 = vmatpush3.msra.mxu0 %v3746_v63  ;;  %2686 = vmatprep.subr.mxu1 %v3989_v46 }
 0x18f   :  { %2791 = vmatprep.subr.mxu0 %v3752_v0  ;;  %2687 = vmatpush3.msra.mxu1 %v3996_v47 }
 0x190   :  { %2792 = vmatpush3.msra.mxu0 %v3758_v1  ;;  %2688 = vmatprep.subr.mxu1 %v4003_v48 }
 0x191   :  { %2793 = vmatprep.subr.mxu0 %v3764_v2  ;;  %2689 = vmatpush3.msra.mxu1 %v4010_v49 }
 0x192   :  { %2794 = vmatpush3.msra.mxu0 %v3770_v3  ;;  %2690 = vmatprep.subr.mxu1 %v4017_v50 }
 0x193   :  { %2795 = vmatprep.subr.mxu0 %v3776_v4  ;;  %2691 = vmatpush3.msra.mxu1 %v4024_v51 }
 0x194   :  { %2796 = vmatpush3.msra.mxu0 %v3782_v5  ;;  %2692 = vmatprep.subr.mxu1 %v4031_v18  ;;  %v1087_v18 = vrot.slane %v1073_v10, %v3439_v14 }
 0x195   :  { %2797 = vmatprep.subr.mxu0 %v3788_v7  ;;  %2693 = vmatpush3.msra.mxu1 %v4038_v22 }
 0x196   :  { %2798 = vmatpush3.msra.mxu0 %v3794_v8  ;;  %2694 = vmatprep.subr.mxu1 %v4045_v24  ;;  %v4185_v8 = vld [vmem:[%s4879_s0 + $0x18] sm:$0xff]  ;;  %v1089_v10 = vcombine.high %v1087_v18, %v1087_v18 }
 0x197   :  { %2799 = vmatprep.subr.mxu0 %v3800_v9  ;;  %2695 = vmatpush3.msra.mxu1 %v4927_v34  ;;  %4931 = vst [vmem:[#allocation12_spill] sm:$0xff] %v4185_v8  ;;  %v1414_v9 = vrot.slane %v4185_v8, %v3439_v14  ;;  %v4932_v34 = vld [vmem:[#allocation18_spill] sm:$0xff]  ;;  %v4937_v8 = vld [vmem:[#allocation11_spill] sm:$0xff] }
 0x198   :  { %2800 = vmatpush3.msra.mxu0 %v4928_v35  ;;  %2696 = vmatprep.subr.mxu1 %v4929_v27  ;;  %v4933_v27 = vld [vmem:[#allocation19_spill] sm:$0xff] }
 0x199   :  { %2801 = vmatprep.subr.mxu0 %v3812_v11  ;;  %2697 = vmatpush3.msra.mxu1 %v4930_v17  ;;  %v1422_v17 = vcombine.high %v1414_v9, %v1414_v9 }
 0x19a   :  { %2802 = vmatpush3.msra.mxu0 %v3818_v12  ;;  %2698 = vmatprep.subr.mxu1 %v4932_v34 }
 0x19b   :  { %2803 = vmatprep.subr.mxu0 %v3824_v13  ;;  %2699 = vmatpush3.msra.mxu1 %v4933_v27 }
 0x19c   :  { %2804 = vmatpush3.msra.mxu0 %v3830_v15  ;;  %2700 = vmatprep.subr.mxu1 %v4091_v25 }
 0x19d   :  { %2805 = vmatprep.subr.mxu0 %v3836_v16  ;;  %2701 = vmatpush3.msra.mxu1 %v4105_v30 }
 0x19e   :  { %2806 = vmatpush3.msra.mxu0 %v3849_v19  ;;  %2702 = vmatprep.subr.mxu1 %v4112_v33 }
 0x19f   :  { %2807 = vmatprep.subr.mxu0 %v3855_v20  ;;  %2703 = vmatpush3.msra.mxu1 %v4119_v31 }
 0x1a0   :  { %1228 = vmatprep.mubr.f32.mxu1 %v1089_v10  ;;  %2808 = vmatpush3.msra.mxu0 %v3861_v21  ;;  %v4936_v10 = vld [vmem:[#allocation10_spill] sm:$0xff] }
 0x1a1   :  { %1492 = vmatprep.mubr.f32.mxu0 %v1422_v17  ;;  %1229 = vmatmul.mubr.f32.vlgmr.msra.gmra.mxu1 %v1087_v18  ;;  %v4935_v18 = vld [vmem:[#allocation20_spill] sm:$0xff] }
 0x1a2   :  { %2742 = vmatprep.subr.mxu1 %v3664_v28  ;;  %1493 = vmatmul.mubr.f32.vlgmr.msra.gmra.mxu0 %v1414_v9  ;;  %v4934_v9 = vld [vmem:[#allocation14_spill] sm:$0xff]  ;;  %v1240_v17 = vcombine.high %v4935_v18, %v4935_v18  ;;  %v4940_v18 = vld [vmem:[#allocation17_spill] sm:$0xff] }
 0x1a3   :  { %2847 = vmatprep.subr.mxu0 %v3562_v6  ;;  %2743 = vmatpush3.msra.mxu1 %v3901_v36 }
 0x1a4   :  { %2848 = vmatpush3.msra.mxu0 %v3676_v52  ;;  %2744 = vmatprep.subr.mxu1 %v3907_v37 }
 0x1a5   :  { %2849 = vmatprep.subr.mxu0 %v3681_v53  ;;  %2745 = vmatpush3.msra.mxu1 %v3913_v38 }
 0x1a6   :  { %2850 = vmatpush3.msra.mxu0 %v3686_v26  ;;  %2746 = vmatprep.subr.mxu1 %v3919_v39 }
 0x1a7   :  { %2851 = vmatprep.subr.mxu0 %v3692_v54  ;;  %2747 = vmatpush3.msra.mxu1 %v3926_v40 }
 0x1a8   :  { %2852 = vmatpush3.msra.mxu0 %v3698_v55  ;;  %2748 = vmatprep.subr.mxu1 %v3933_v41 }
 0x1a9   :  { %2853 = vmatprep.subr.mxu0 %v3704_v56  ;;  %2749 = vmatpush3.msra.mxu1 %v3940_v42 }
 0x1aa   :  { %2854 = vmatpush3.msra.mxu0 %v3710_v57  ;;  %2750 = vmatprep.subr.mxu1 %v3947_v43 }
 0x1ab   :  { %2855 = vmatprep.subr.mxu0 %v3716_v58  ;;  %2751 = vmatpush3.msra.mxu1 %v3954_v44 }
 0x1ac   :  { %2856 = vmatpush3.msra.mxu0 %v3722_v59  ;;  %2752 = vmatprep.subr.mxu1 %v3961_v32 }
 0x1ad   :  { %2857 = vmatprep.subr.mxu0 %v3728_v60  ;;  %2753 = vmatpush3.msra.mxu1 %v3968_v23 }
 0x1ae   :  { %2858 = vmatpush3.msra.mxu0 %v3734_v61  ;;  %2754 = vmatprep.subr.mxu1 %v3975_v29 }
 0x1af   :  { %2859 = vmatprep.subr.mxu0 %v3740_v62  ;;  %2755 = vmatpush3.msra.mxu1 %v3982_v45 }
 0x1b0   :  { %2860 = vmatpush3.msra.mxu0 %v3746_v63  ;;  %2756 = vmatprep.subr.mxu1 %v3989_v46 }
 0x1b1   :  { %2861 = vmatprep.subr.mxu0 %v3752_v0  ;;  %2757 = vmatpush3.msra.mxu1 %v3996_v47 }
 0x1b2   :  { %2862 = vmatpush3.msra.mxu0 %v3758_v1  ;;  %2758 = vmatprep.subr.mxu1 %v4003_v48 }
 0x1b3   :  { %2863 = vmatprep.subr.mxu0 %v3764_v2  ;;  %2759 = vmatpush3.msra.mxu1 %v4010_v49 }
 0x1b4   :  { %2864 = vmatpush3.msra.mxu0 %v3770_v3  ;;  %2760 = vmatprep.subr.mxu1 %v4017_v50 }
 0x1b5   :  { %2865 = vmatprep.subr.mxu0 %v3776_v4  ;;  %2761 = vmatpush3.msra.mxu1 %v4024_v51  ;;  %v4938_v4 = vld [vmem:[#allocation15_spill] sm:$0xff] }
 0x1b6   :  { %2866 = vmatpush3.msra.mxu0 %v3782_v5  ;;  %2762 = vmatprep.subr.mxu1 %v4934_v9  ;;  %v4939_v5 = vld [vmem:[#allocation16_spill] sm:$0xff]  ;;  %v1254_v9 = vrot.slane %v1240_v17, %v3439_v14 }
 0x1b7   :  { %2867 = vmatprep.subr.mxu0 %v3788_v7  ;;  %2763 = vmatpush3.msra.mxu1 %v4038_v22 }
 0x1b8   :  { %2868 = vmatpush3.msra.mxu0 %v4936_v10  ;;  %2764 = vmatprep.subr.mxu1 %v4045_v24  ;;  %v4259_v10 = vld [vmem:[%s4879_s0 + $0x20] sm:$0xff]  ;;  %v1256_v17 = vcombine.high %v1254_v9, %v1254_v9 }
 0x1b9   :  { %2869 = vmatprep.subr.mxu0 %v4937_v8  ;;  %2765 = vmatpush3.msra.mxu1 %v4938_v4  ;;  %4941 = vst [vmem:[#allocation18_spill] sm:$0xff] %v4259_v10  ;;  %v1581_v8 = vrot.slane %v4259_v10, %v3439_v14  ;;  %v4946_v10 = vld [vmem:[#allocation10_spill] sm:$0xff] }
 0x1ba   :  { %2870 = vmatpush3.msra.mxu0 %v4928_v35  ;;  %2766 = vmatprep.subr.mxu1 %v4939_v5 }
 0x1bb   :  { %2871 = vmatprep.subr.mxu0 %v3812_v11  ;;  %2767 = vmatpush3.msra.mxu1 %v4940_v18  ;;  %v1589_v18 = vcombine.high %v1581_v8, %v1581_v8 }
 0x1bc   :  { %2872 = vmatpush3.msra.mxu0 %v3818_v12  ;;  %2768 = vmatprep.subr.mxu1 %v4932_v34 }
 0x1bd   :  { %2873 = vmatprep.subr.mxu0 %v3824_v13  ;;  %2769 = vmatpush3.msra.mxu1 %v4933_v27 }
 0x1be   :  { %2874 = vmatpush3.msra.mxu0 %v3830_v15  ;;  %2770 = vmatprep.subr.mxu1 %v4091_v25 }
 0x1bf   :  { %2875 = vmatprep.subr.mxu0 %v3836_v16  ;;  %2771 = vmatpush3.msra.mxu1 %v4105_v30 }
 0x1c0   :  { %2876 = vmatpush3.msra.mxu0 %v3849_v19  ;;  %2772 = vmatprep.subr.mxu1 %v4112_v33 }
 0x1c1   :  { %2877 = vmatprep.subr.mxu0 %v3855_v20  ;;  %2773 = vmatpush3.msra.mxu1 %v4119_v31 }
 0x1c2   :  { %1395 = vmatprep.mubr.f32.mxu1 %v1256_v17  ;;  %2878 = vmatpush3.msra.mxu0 %v3861_v21 }
 0x1c3   :  { %1659 = vmatprep.mubr.f32.mxu0 %v1589_v18  ;;  %1396 = vmatmul.mubr.f32.vlgmr.msra.gmra.mxu1 %v1254_v9  ;;  %v4944_v9 = vld [vmem:[#allocation14_spill] sm:$0xff]  ;;  %v4945_v18 = vld [vmem:[#allocation12_spill] sm:$0xff] }
 0x1c4   :  { %2812 = vmatprep.subr.mxu1 %v3664_v28  ;;  %1660 = vmatmul.mubr.f32.vlgmr.msra.gmra.mxu0 %v1581_v8  ;;  %v4943_v8 = vld [vmem:[#allocation9_spill] sm:$0xff]  ;;  %v1407_v17 = vcombine.high %v4945_v18, %v4945_v18 }
 0x1c5   :  { %2917 = vmatprep.subr.mxu0 %v3562_v6  ;;  %2813 = vmatpush3.msra.mxu1 %v3901_v36  ;;  %v4942_v6 = vld [vmem:[#allocation8_spill] sm:$0xff]  ;;  %v4948_v18 = vld [vmem:[#allocation17_spill] sm:$0xff] }
 0x1c6   :  { %2918 = vmatpush3.msra.mxu0 %v3676_v52  ;;  %2814 = vmatprep.subr.mxu1 %v3907_v37 }
 0x1c7   :  { %2919 = vmatprep.subr.mxu0 %v3681_v53  ;;  %2815 = vmatpush3.msra.mxu1 %v3913_v38 }
 0x1c8   :  { %2920 = vmatpush3.msra.mxu0 %v3686_v26  ;;  %2816 = vmatprep.subr.mxu1 %v3919_v39 }
 0x1c9   :  { %2921 = vmatprep.subr.mxu0 %v3692_v54  ;;  %2817 = vmatpush3.msra.mxu1 %v3926_v40 }
 0x1ca   :  { %2922 = vmatpush3.msra.mxu0 %v3698_v55  ;;  %2818 = vmatprep.subr.mxu1 %v3933_v41 }
 0x1cb   :  { %2923 = vmatprep.subr.mxu0 %v3704_v56  ;;  %2819 = vmatpush3.msra.mxu1 %v3940_v42 }
 0x1cc   :  { %2924 = vmatpush3.msra.mxu0 %v3710_v57  ;;  %2820 = vmatprep.subr.mxu1 %v3947_v43 }
 0x1cd   :  { %2925 = vmatprep.subr.mxu0 %v3716_v58  ;;  %2821 = vmatpush3.msra.mxu1 %v3954_v44 }
 0x1ce   :  { %2926 = vmatpush3.msra.mxu0 %v3722_v59  ;;  %2822 = vmatprep.subr.mxu1 %v3961_v32 }
 0x1cf   :  { %2927 = vmatprep.subr.mxu0 %v3728_v60  ;;  %2823 = vmatpush3.msra.mxu1 %v3968_v23 }
 0x1d0   :  { %2928 = vmatpush3.msra.mxu0 %v3734_v61  ;;  %2824 = vmatprep.subr.mxu1 %v3975_v29 }
 0x1d1   :  { %2929 = vmatprep.subr.mxu0 %v3740_v62  ;;  %2825 = vmatpush3.msra.mxu1 %v3982_v45 }
 0x1d2   :  { %2930 = vmatpush3.msra.mxu0 %v3746_v63  ;;  %2826 = vmatprep.subr.mxu1 %v3989_v46 }
 0x1d3   :  { %2931 = vmatprep.subr.mxu0 %v3752_v0  ;;  %2827 = vmatpush3.msra.mxu1 %v3996_v47 }
 0x1d4   :  { %2932 = vmatpush3.msra.mxu0 %v3758_v1  ;;  %2828 = vmatprep.subr.mxu1 %v4003_v48 }
 0x1d5   :  { %2933 = vmatprep.subr.mxu0 %v3764_v2  ;;  %2829 = vmatpush3.msra.mxu1 %v4010_v49 }
 0x1d6   :  { %2934 = vmatpush3.msra.mxu0 %v3770_v3  ;;  %2830 = vmatprep.subr.mxu1 %v4017_v50  ;;  %v4947_v50 = vld [vmem:[#allocation11_spill] sm:$0xff] }
 0x1d7   :  { %2935 = vmatprep.subr.mxu0 %v4942_v6  ;;  %2831 = vmatpush3.msra.mxu1 %v4024_v51 }
 0x1d8   :  { %2936 = vmatpush3.msra.mxu0 %v4943_v8  ;;  %2832 = vmatprep.subr.mxu1 %v4944_v9  ;;  %v1421_v9 = vrot.slane %v1407_v17, %v3439_v14 }
 0x1d9   :  { %2937 = vmatprep.subr.mxu0 %v3788_v7  ;;  %2833 = vmatpush3.msra.mxu1 %v4038_v22 }
 0x1da   :  { %2938 = vmatpush3.msra.mxu0 %v4946_v10  ;;  %2834 = vmatprep.subr.mxu1 %v4045_v24  ;;  %v4333_v10 = vld [vmem:[%s4879_s0 + $0x28] sm:$0xff]  ;;  %v1423_v17 = vcombine.high %v1421_v9, %v1421_v9 }
 0x1db   :  { %2939 = vmatprep.subr.mxu0 %v4947_v50  ;;  %2835 = vmatpush3.msra.mxu1 %v4938_v4  ;;  %4949 = vst [vmem:[#allocation19_spill] sm:$0xff] %v4333_v10  ;;  %v1748_v50 = vrot.slane %v4333_v10, %v3439_v14  ;;  %v4354_v10 = vld [vmem:[%s4881_s2 + $0xf8] sm:$0xff] }
 0x1dc   :  { %2940 = vmatpush3.msra.mxu0 %v4928_v35  ;;  %2836 = vmatprep.subr.mxu1 %v4939_v5 }
 0x1dd   :  { %2941 = vmatprep.subr.mxu0 %v3812_v11  ;;  %2837 = vmatpush3.msra.mxu1 %v4948_v18  ;;  %v1756_v18 = vcombine.high %v1748_v50, %v1748_v50 }
 0x1de   :  { %2942 = vmatpush3.msra.mxu0 %v3818_v12  ;;  %2838 = vmatprep.subr.mxu1 %v4932_v34 }
 0x1df   :  { %2943 = vmatprep.subr.mxu0 %v3824_v13  ;;  %2839 = vmatpush3.msra.mxu1 %v4933_v27 }
 0x1e0   :  { %2944 = vmatpush3.msra.mxu0 %v3830_v15  ;;  %2840 = vmatprep.subr.mxu1 %v4091_v25 }
 0x1e1   :  { %2945 = vmatprep.subr.mxu0 %v3836_v16  ;;  %2841 = vmatpush3.msra.mxu1 %v4105_v30 }
 0x1e2   :  { %2946 = vmatpush3.msra.mxu0 %v3849_v19  ;;  %2842 = vmatprep.subr.mxu1 %v4112_v33 }
 0x1e3   :  { %2947 = vmatprep.subr.mxu0 %v3855_v20  ;;  %2843 = vmatpush3.msra.mxu1 %v4119_v31 }
 0x1e4   :  { %1562 = vmatprep.mubr.f32.mxu1 %v1423_v17  ;;  %2948 = vmatpush3.msra.mxu0 %v3861_v21  ;;  %v4953_v17 = vld [vmem:[#allocation10_spill] sm:$0xff] }
 0x1e5   :  { %1826 = vmatprep.mubr.f32.mxu0 %v1756_v18  ;;  %1563 = vmatmul.mubr.f32.vlgmr.msra.gmra.mxu1 %v1421_v9  ;;  %v4952_v9 = vld [vmem:[#allocation18_spill] sm:$0xff] }
 0x1e6   :  { %2882 = vmatprep.subr.mxu1 %v3664_v28  ;;  %1827 = vmatmul.mubr.f32.vlgmr.msra.gmra.mxu0 %v1748_v50  ;;  %v4950_v28 = vld [vmem:[#allocation13_spill] sm:$0xff]  ;;  %v4951_v50 = vld [vmem:[#allocation14_spill] sm:$0xff]  ;;  %v1574_v18 = vcombine.high %v4952_v9, %v4952_v9 }
 0x1e7   :  { %2987 = vmatprep.subr.mxu0 %v4354_v10  ;;  %2883 = vmatpush3.msra.mxu1 %v3901_v36  ;;  %v4955_v9 = vld [vmem:[#allocation17_spill] sm:$0xff] }
 0x1e8   :  { %2988 = vmatpush3.msra.mxu0 %v3676_v52  ;;  %2884 = vmatprep.subr.mxu1 %v3907_v37 }
 0x1e9   :  { %2989 = vmatprep.subr.mxu0 %v3681_v53  ;;  %2885 = vmatpush3.msra.mxu1 %v3913_v38 }
 0x1ea   :  { %2990 = vmatpush3.msra.mxu0 %v3686_v26  ;;  %2886 = vmatprep.subr.mxu1 %v3919_v39 }
 0x1eb   :  { %2991 = vmatprep.subr.mxu0 %v3692_v54  ;;  %2887 = vmatpush3.msra.mxu1 %v3926_v40 }
 0x1ec   :  { %2992 = vmatpush3.msra.mxu0 %v3698_v55  ;;  %2888 = vmatprep.subr.mxu1 %v3933_v41 }
 0x1ed   :  { %2993 = vmatprep.subr.mxu0 %v3704_v56  ;;  %2889 = vmatpush3.msra.mxu1 %v3940_v42 }
 0x1ee   :  { %2994 = vmatpush3.msra.mxu0 %v3710_v57  ;;  %2890 = vmatprep.subr.mxu1 %v3947_v43 }
 0x1ef   :  { %2995 = vmatprep.subr.mxu0 %v3716_v58  ;;  %2891 = vmatpush3.msra.mxu1 %v3954_v44 }
 0x1f0   :  { %2996 = vmatpush3.msra.mxu0 %v3722_v59  ;;  %2892 = vmatprep.subr.mxu1 %v3961_v32 }
 0x1f1   :  { %2997 = vmatprep.subr.mxu0 %v3728_v60  ;;  %2893 = vmatpush3.msra.mxu1 %v3968_v23 }
 0x1f2   :  { %2998 = vmatpush3.msra.mxu0 %v3734_v61  ;;  %2894 = vmatprep.subr.mxu1 %v3975_v29 }
 0x1f3   :  { %2999 = vmatprep.subr.mxu0 %v3740_v62  ;;  %2895 = vmatpush3.msra.mxu1 %v3982_v45 }
 0x1f4   :  { %3000 = vmatpush3.msra.mxu0 %v3746_v63  ;;  %2896 = vmatprep.subr.mxu1 %v3989_v46 }
 0x1f5   :  { %3001 = vmatprep.subr.mxu0 %v3752_v0  ;;  %2897 = vmatpush3.msra.mxu1 %v3996_v47 }
 0x1f6   :  { %3002 = vmatpush3.msra.mxu0 %v3758_v1  ;;  %2898 = vmatprep.subr.mxu1 %v4003_v48 }
 0x1f7   :  { %3003 = vmatprep.subr.mxu0 %v3764_v2  ;;  %2899 = vmatpush3.msra.mxu1 %v4010_v49 }
 0x1f8   :  { %3004 = vmatpush3.msra.mxu0 %v3770_v3  ;;  %2900 = vmatprep.subr.mxu1 %v4950_v28  ;;  %v4954_v28 = vld [vmem:[#allocation11_spill] sm:$0xff] }
 0x1f9   :  { %3005 = vmatprep.subr.mxu0 %v4942_v6  ;;  %2901 = vmatpush3.msra.mxu1 %v4024_v51 }
 0x1fa   :  { %3006 = vmatpush3.msra.mxu0 %v4943_v8  ;;  %2902 = vmatprep.subr.mxu1 %v4951_v50  ;;  %v1588_v50 = vrot.slane %v1574_v18, %v3439_v14 }
 0x1fb   :  { %3007 = vmatprep.subr.mxu0 %v3788_v7  ;;  %2903 = vmatpush3.msra.mxu1 %v4038_v22 }
 0x1fc   :  { %3008 = vmatpush3.msra.mxu0 %v4953_v17  ;;  %2904 = vmatprep.subr.mxu1 %v4045_v24  ;;  %v4412_v17 = vld [vmem:[%s4879_s0 + $0x30] sm:$0xff]  ;;  %v1590_v18 = vcombine.high %v1588_v50, %v1588_v50 }
 0x1fd   :  { %3009 = vmatprep.subr.mxu0 %v4954_v28  ;;  %2905 = vmatpush3.msra.mxu1 %v4938_v4  ;;  %v1915_v28 = vrot.slane %v4412_v17, %v3439_v14 }
 0x1fe   :  { %3010 = vmatpush3.msra.mxu0 %v4928_v35  ;;  %2906 = vmatprep.subr.mxu1 %v4939_v5 }
 0x1ff   :  { %3011 = vmatprep.subr.mxu0 %v3812_v11  ;;  %2907 = vmatpush3.msra.mxu1 %v4955_v9  ;;  %v1923_v9 = vcombine.high %v1915_v28, %v1915_v28 }
 0x200   :  { %3012 = vmatpush3.msra.mxu0 %v3818_v12  ;;  %2908 = vmatprep.subr.mxu1 %v4932_v34  ;;  %v4432_v12 = vld [vmem:[%s4881_s2 + $0x1f8] sm:$0xff] }
 0x201   :  { %3013 = vmatprep.subr.mxu0 %v3824_v13  ;;  %2909 = vmatpush3.msra.mxu1 %v4933_v27  ;;  %v3266_v13 = vld [vmem:[%s4881_s2 + $0x78] sm:$0xff] }
 0x202   :  { %3014 = vmatpush3.msra.mxu0 %v3830_v15  ;;  %2910 = vmatprep.subr.mxu1 %v4091_v25  ;;  %v3267_v15 = vld [vmem:[%s4881_s2 + $0xf0] sm:$0xff] }
 0x203   :  { %3015 = vmatprep.subr.mxu0 %v3836_v16  ;;  %2911 = vmatpush3.msra.mxu1 %v4105_v30  ;;  %v3268_v16 = vld [vmem:[%s4881_s2 + $0x70] sm:$0xff] }
 0x204   :  { %3016 = vmatpush3.msra.mxu0 %v3849_v19  ;;  %2912 = vmatprep.subr.mxu1 %v4112_v33  ;;  %v3269_v19 = vld [vmem:[%s4881_s2 + $0xe8] sm:$0xff] }
 0x205   :  { %3017 = vmatprep.subr.mxu0 %v3855_v20  ;;  %2913 = vmatpush3.msra.mxu1 %v4119_v31  ;;  %v3270_v20 = vld [vmem:[%s4881_s2 + $0x68] sm:$0xff] }
 0x206   :  { %1729 = vmatprep.mubr.f32.mxu1 %v1590_v18  ;;  %3018 = vmatpush3.msra.mxu0 %v3861_v21  ;;  %v2529_v21 = vpop.f32.mrf.mxu0 }
 0x207   :  { %1993 = vmatprep.mubr.f32.mxu0 %v1923_v9  ;;  %1730 = vmatmul.mubr.f32.vlgmr.msra.gmra.mxu1 %v1588_v50 }
 0x208   :  { %2952 = vmatprep.subr.mxu1 %v4432_v12  ;;  %1994 = vmatmul.mubr.f32.vlgmr.msra.gmra.mxu0 %v1915_v28 }
 0x209   :  { %3057 = vmatprep.subr.mxu0 %v4354_v10  ;;  %2953 = vmatpush3.msra.mxu1 %v3901_v36 }
 0x20a   :  { %3058 = vmatpush3.msra.mxu0 %v3676_v52  ;;  %2954 = vmatprep.subr.mxu1 %v3907_v37  ;;  %v4956_v52 = vld [vmem:[#allocation13_spill] sm:$0xff] }
 0x20b   :  { %3059 = vmatprep.subr.mxu0 %v3681_v53  ;;  %2955 = vmatpush3.msra.mxu1 %v3913_v38  ;;  %v4957_v53 = vld [vmem:[#allocation14_spill] sm:$0xff] }
 0x20c   :  { %3060 = vmatpush3.msra.mxu0 %v3686_v26  ;;  %2956 = vmatprep.subr.mxu1 %v3919_v39  ;;  %v4958_v26 = vld [vmem:[#allocation19_spill] sm:$0xff] }
 0x20d   :  { %3061 = vmatprep.subr.mxu0 %v3692_v54  ;;  %2957 = vmatpush3.msra.mxu1 %v3926_v40  ;;  %v1741_v54 = vcombine.high %v4958_v26, %v4958_v26  ;;  %v3285_v26 = vld [vmem:[%s4881_s2 + $0xa8] sm:$0xff] }
 0x20e   :  { %3062 = vmatpush3.msra.mxu0 %v3698_v55  ;;  %2958 = vmatprep.subr.mxu1 %v3933_v41  ;;  %v4959_v55 = vld [vmem:[#allocation10_spill] sm:$0xff] }
 0x20f   :  { %3063 = vmatprep.subr.mxu0 %v3704_v56  ;;  %2959 = vmatpush3.msra.mxu1 %v3940_v42  ;;  %v4960_v56 = vld [vmem:[#allocation11_spill] sm:$0xff] }
 0x210   :  { %3064 = vmatpush3.msra.mxu0 %v3710_v57  ;;  %2960 = vmatprep.subr.mxu1 %v3947_v43  ;;  %v1755_v57 = vrot.slane %v1741_v54, %v3439_v14  ;;  %v3286_v54 = vld [vmem:[%s4881_s2 + $0x28] sm:$0xff] }
 0x211   :  { %3065 = vmatprep.subr.mxu0 %v3716_v58  ;;  %2961 = vmatpush3.msra.mxu1 %v3954_v44  ;;  %v4961_v58 = vld [vmem:[#allocation17_spill] sm:$0xff] }
 0x212   :  { %3066 = vmatpush3.msra.mxu0 %v3722_v59  ;;  %2962 = vmatprep.subr.mxu1 %v3961_v32  ;;  %v4491_v59 = vld [vmem:[%s4879_s0 + $0x38] sm:$0xff] }
 0x213   :  { %3067 = vmatprep.subr.mxu0 %v3728_v60  ;;  %2963 = vmatpush3.msra.mxu1 %v3968_v23  ;;  %v2082_v60 = vrot.slane %v4491_v59, %v3439_v14 }
 0x214   :  { %3068 = vmatpush3.msra.mxu0 %v3734_v61  ;;  %2964 = vmatprep.subr.mxu1 %v3975_v29  ;;  %v4498_v61 = vld [vmem:[%s4881_s2 + $0x18] sm:$0xff] }
 0x215   :  { %3069 = vmatprep.subr.mxu0 %v3740_v62  ;;  %2965 = vmatpush3.msra.mxu1 %v3982_v45  ;;  %v4505_v62 = vld [vmem:[%s4881_s2 + $0x90] sm:$0xff] }
 0x216   :  { %3070 = vmatpush3.msra.mxu0 %v3746_v63  ;;  %2966 = vmatprep.subr.mxu1 %v3989_v46  ;;  %v4512_v63 = vld [vmem:[%s4881_s2 + $0x10] sm:$0xff] }
 0x217   :  { %3071 = vmatprep.subr.mxu0 %v3752_v0  ;;  %2967 = vmatpush3.msra.mxu1 %v3996_v47  ;;  %v1757_v0 = vcombine.high %v1755_v57, %v1755_v57 }
 0x218   :  { %3072 = vmatpush3.msra.mxu0 %v3758_v1  ;;  %2968 = vmatprep.subr.mxu1 %v4003_v48  ;;  %v4519_v1 = vld [vmem:[%s4881_s2 + $0x88] sm:$0xff] }
 0x219   :  { %3073 = vmatprep.subr.mxu0 %v3764_v2  ;;  %2969 = vmatpush3.msra.mxu1 %v4010_v49  ;;  %v2090_v2 = vcombine.high %v2082_v60, %v2082_v60 }
 0x21a   :  { %3074 = vmatpush3.msra.mxu0 %v3770_v3  ;;  %2970 = vmatprep.subr.mxu1 %v4956_v52  ;;  %v4526_v3 = vld [vmem:[%s4881_s2 + $0x8] sm:$0xff] }
 0x21b   :  { %3075 = vmatprep.subr.mxu0 %v4942_v6  ;;  %2971 = vmatpush3.msra.mxu1 %v4024_v51  ;;  %v3279_v6 = vld [vmem:[%s4881_s2 + $0xc0] sm:$0xff] }
 0x21c   :  { %3076 = vmatpush3.msra.mxu0 %v4943_v8  ;;  %2972 = vmatprep.subr.mxu1 %v4957_v53  ;;  %v3280_v8 = vld [vmem:[%s4881_s2 + $0x40] sm:$0xff] }
 0x21d   :  { %3077 = vmatprep.subr.mxu0 %v3788_v7  ;;  %2973 = vmatpush3.msra.mxu1 %v4038_v22  ;;  %v4533_v7 = vld [vmem:[%s4881_s2 + $0x80] sm:$0xff] }
 0x21e   :  { %3078 = vmatpush3.msra.mxu0 %v4959_v55  ;;  %2974 = vmatprep.subr.mxu1 %v4045_v24  ;;  %v2075_v55 = vcombine.high %v4491_v59, %v4491_v59  ;;  %v4656_v59 = vld [vmem:[%s4879_s0 + $0x40] sm:$0xff] }
 0x21f   :  { %3079 = vmatprep.subr.mxu0 %v4960_v56  ;;  %2975 = vmatpush3.msra.mxu1 %v4938_v4 }
 0x220   :  { %3080 = vmatpush3.msra.mxu0 %v4928_v35  ;;  %2976 = vmatprep.subr.mxu1 %v4939_v5 }
 0x221   :  { %3081 = vmatprep.subr.mxu0 %v3812_v11  ;;  %2977 = vmatpush3.msra.mxu1 %v4961_v58  ;;  %v4540_v11 = vld [vmem:[%s4881_s2] sm:$0xff] }
 0x222   :  { %3082 = vmatpush3.msra.mxu0 %v4498_v61  ;;  %2978 = vmatprep.subr.mxu1 %v4932_v34 }
 0x223   :  { %3083 = vmatprep.subr.mxu0 %v4505_v62  ;;  %2979 = vmatpush3.msra.mxu1 %v4933_v27 }
 0x224   :  { %3084 = vmatpush3.msra.mxu0 %v4512_v63  ;;  %2980 = vmatprep.subr.mxu1 %v4091_v25 }
 0x225   :  { %3085 = vmatprep.subr.mxu0 %v4519_v1  ;;  %2981 = vmatpush3.msra.mxu1 %v4105_v30 }
 0x226   :  { %3086 = vmatpush3.msra.mxu0 %v4526_v3  ;;  %2982 = vmatprep.subr.mxu1 %v4112_v33 }
 0x227   :  { %3087 = vmatprep.subr.mxu0 %v4533_v7  ;;  %2983 = vmatpush3.msra.mxu1 %v4119_v31 }
 0x228   :  { %1896 = vmatprep.mubr.f32.mxu1 %v1757_v0  ;;  %3088 = vmatpush3.msra.mxu0 %v4540_v11  ;;  %v4665_v0 = vrot.slane %v2075_v55, %v3439_v14 }
 0x229   :  { %2160 = vmatprep.mubr.f32.mxu0 %v2090_v2  ;;  %1897 = vmatmul.mubr.f32.vlgmr.msra.gmra.mxu1 %v1755_v57  ;;  %v4723_v2 = vld [vmem:[%s4881_s2 + $0x160] sm:$0xff] }
 0x22a   :  { %3022 = vmatprep.subr.mxu1 %v4432_v12  ;;  %2161 = vmatmul.mubr.f32.vlgmr.msra.gmra.mxu0 %v2082_v60 }
 0x22b   :  { %3127 = vmatprep.subr.mxu0 %v4354_v10  ;;  %3023 = vmatpush3.msra.mxu1 %v3901_v36  ;;  %v3271_v36 = vld [vmem:[%s4881_s2 + $0xe0] sm:$0xff] }
 0x22c   :  { %3128 = vmatpush3.msra.mxu0 %v3266_v13  ;;  %3024 = vmatprep.subr.mxu1 %v3907_v37  ;;  %v3272_v37 = vld [vmem:[%s4881_s2 + $0x60] sm:$0xff]  ;;  %v4742_v13 = vld [vmem:[%s4881_s2 + $0x1d0] sm:$0xff] }
 0x22d   :  { %3129 = vmatprep.subr.mxu0 %v3267_v15  ;;  %3025 = vmatpush3.msra.mxu1 %v3913_v38  ;;  %v2564_v38 = vpop.f32.mrf.mxu1 }
 0x22e   :  { %3130 = vmatpush3.msra.mxu0 %v3268_v16  ;;  %3026 = vmatprep.subr.mxu1 %v3919_v39  ;;  %v3273_v39 = vld [vmem:[%s4881_s2 + $0xd8] sm:$0xff]  ;;  %v4749_v16 = vld [vmem:[%s4881_s2 + $0x150] sm:$0xff] }
 0x22f   :  { %3131 = vmatprep.subr.mxu0 %v3269_v19  ;;  %3027 = vmatpush3.msra.mxu1 %v3926_v40  ;;  %v3274_v40 = vld [vmem:[%s4881_s2 + $0x58] sm:$0xff]  ;;  %v4755_v19 = vld [vmem:[%s4881_s2 + $0x1c8] sm:$0xff] }
 0x230   :  { %3132 = vmatpush3.msra.mxu0 %v3270_v20  ;;  %3028 = vmatprep.subr.mxu1 %v3933_v41  ;;  %v2530_v41 = vpop.f32.mrf.mxu0 }
 0x231   :  { %3133 = vmatprep.subr.mxu0 %v3271_v36  ;;  %3029 = vmatpush3.msra.mxu1 %v3940_v42  ;;  %v3275_v42 = vld [vmem:[%s4881_s2 + $0xd0] sm:$0xff]  ;;  %v2531_v35 = vadd.f32 %v2530_v41, %v2529_v21  ;;  %v4761_v21 = vld [vmem:[%s4881_s2 + $0x148] sm:$0xff]  ;;  %v4767_v36 = vld [vmem:[%s4881_s2 + $0x1c0] sm:$0xff] }
 0x232   :  { %3134 = vmatpush3.msra.mxu0 %v3272_v37  ;;  %3030 = vmatprep.subr.mxu1 %v3947_v43  ;;  %v3276_v43 = vld [vmem:[%s4881_s2 + $0x50] sm:$0xff]  ;;  %v2599_v10 = vpop.f32.mrf.mxu0  ;;  %v4773_v37 = vld [vmem:[%s4881_s2 + $0x140] sm:$0xff] }
 0x233   :  { %3135 = vmatprep.subr.mxu0 %v3273_v39  ;;  %3031 = vmatpush3.msra.mxu1 %v3954_v44  ;;  %v2565_v44 = vpop.f32.mrf.mxu1  ;;  %v3308_v41 = vld [vmem:[%s4881_s2 + $0x1b0] sm:$0xff] }
 0x234   :  { %3136 = vmatpush3.msra.mxu0 %v3274_v40  ;;  %3032 = vmatprep.subr.mxu1 %v3961_v32  ;;  %v3277_v32 = vld [vmem:[%s4881_s2 + $0xc8] sm:$0xff]  ;;  %v2600_v50 = vpop.f32.mrf.mxu0  ;;  %v4785_v40 = vld [vmem:[%s4881_s2 + $0x138] sm:$0xff] }
 0x235   :  { %3137 = vmatprep.subr.mxu0 %v3275_v42  ;;  %3033 = vmatpush3.msra.mxu1 %v3968_v23  ;;  %v3278_v23 = vld [vmem:[%s4881_s2 + $0x48] sm:$0xff]  ;;  %v2601_v9 = vadd.f32 %v2600_v50, %v2599_v10  ;;  %v3309_v42 = vld [vmem:[%s4881_s2 + $0x130] sm:$0xff]  ;;  %v3313_v10 = vld [vmem:[%s4881_s2 + $0x120] sm:$0xff] }
 0x236   :  { %3138 = vmatpush3.msra.mxu0 %v3276_v43  ;;  %3034 = vmatprep.subr.mxu1 %v3975_v29  ;;  %v2495_v29 = vld [vmem:[%s4883_s4] ss:$0 sm:$0xff]  ;;  %v2669_v20 = vpop.f32.mrf.mxu0  ;;  %v3316_v50 = vld [vmem:[%s4881_s2 + $0x190] sm:$0xff] }
 0x237   :  { %3139 = vmatprep.subr.mxu0 %v3277_v32  ;;  %3035 = vmatpush3.msra.mxu1 %v3982_v45  ;;  %v2566_v45 = vadd.f32 %v2565_v44, %v2564_v38  ;;  %v760_v28 = vadd.f32 %v2531_v35, %v2495_v29  ;;  %v4779_v38 = vld [vmem:[%s4881_s2 + $0x1b8] sm:$0xff]  ;;  %v3310_v44 = vld [vmem:[%s4881_s2 + $0x1a8] sm:$0xff]  ;;  %v3312_v29 = vld [vmem:[%s4881_s2 + $0x1a0] sm:$0xff] }
 0x238   :  { %3140 = vmatpush3.msra.mxu0 %v3278_v23  ;;  %3036 = vmatprep.subr.mxu1 %v3989_v46  ;;  %v3281_v46 = vld [vmem:[%s4881_s2 + $0xb8] sm:$0xff]  ;;  %v2670_v39 = vpop.f32.mrf.mxu0  ;;  %v3311_v32 = vld [vmem:[%s4881_s2 + $0x128] sm:$0xff]  ;;  %v2242_v23 = vcombine.high %v4656_v59, %v4656_v59 }
 0x239   :  { %3141 = vmatprep.subr.mxu0 %v3279_v6  ;;  %3037 = vmatpush3.msra.mxu1 %v3996_v47  ;;  %v3282_v47 = vld [vmem:[%s4881_s2 + $0x38] sm:$0xff]  ;;  %v4621_v18 = vadd.f32 %v2566_v45, %v760_v28  ;;  %v2671_v43 = vadd.f32 %v2670_v39, %v2669_v20 }
 0x23a   :  { %3142 = vmatpush3.msra.mxu0 %v3280_v8  ;;  %3038 = vmatprep.subr.mxu1 %v4003_v48  ;;  %v3283_v48 = vld [vmem:[%s4881_s2 + $0xb0] sm:$0xff]  ;;  %v3314_v8 = vld [vmem:[%s4881_s2 + $0x198] sm:$0xff] }
 0x23b   :  { %3143 = vmatprep.subr.mxu0 %v3281_v46  ;;  %3039 = vmatpush3.msra.mxu1 %v4010_v49  ;;  %v3284_v49 = vld [vmem:[%s4881_s2 + $0x30] sm:$0xff]  ;;  %v987_v56 = vadd.f32 %v2601_v9, %v4621_v18  ;;  %v1161_v45 = vadd.f32 %v2671_v43, %v4621_v18  ;;  %v3315_v28 = vld [vmem:[%s4881_s2 + $0x118] sm:$0xff] }
 0x23c   :  { %3144 = vmatpush3.msra.mxu0 %v3282_v47  ;;  %3040 = vmatprep.subr.mxu1 %v4956_v52  ;;  %v1908_v52 = vcombine.high %v4412_v17, %v4412_v17  ;;  %v2256_v47 = vrot.slane %v2242_v23, %v3439_v14  ;;  %v3317_v9 = vld [vmem:[%s4881_s2 + $0x110] sm:$0xff] }
 0x23d   :  { %3145 = vmatprep.subr.mxu0 %v3283_v48  ;;  %3041 = vmatpush3.msra.mxu1 %v4024_v51 }
 0x23e   :  { %3146 = vmatpush3.msra.mxu0 %v3284_v49  ;;  %3042 = vmatprep.subr.mxu1 %v4957_v53  ;;  %v3287_v53 = vld [vmem:[%s4881_s2 + $0xa0] sm:$0xff]  ;;  %v3318_v49 = vld [vmem:[%s4881_s2 + $0x188] sm:$0xff] }
 0x23f   :  { %3147 = vmatprep.subr.mxu0 %v3285_v26  ;;  %3043 = vmatpush3.msra.mxu1 %v4038_v22  ;;  %v2634_v51 = vpop.f32.mrf.mxu1  ;;  %v3288_v22 = vld [vmem:[%s4881_s2 + $0x20] sm:$0xff] }
 0x240   :  { %3148 = vmatpush3.msra.mxu0 %v3286_v54  ;;  %3044 = vmatprep.subr.mxu1 %v4045_v24  ;;  %v1922_v24 = vrot.slane %v1908_v52, %v3439_v14  ;;  %v2258_v52 = vcombine.high %v2256_v47, %v2256_v47  ;;  %v3320_v26 = vld [vmem:[%s4881_s2 + $0x180] sm:$0xff] }
 0x241   :  { %3149 = vmatprep.subr.mxu0 %v3287_v53  ;;  %3045 = vmatpush3.msra.mxu1 %v4938_v4  ;;  %v2635_v17 = vpop.f32.mrf.mxu1  ;;  %v3289_v4 = vld [vmem:[%s4881_s2 + $0x98] sm:$0xff] }
 0x242   :  { %3150 = vmatpush3.msra.mxu0 %v3288_v22  ;;  %3046 = vmatprep.subr.mxu1 %v4939_v5  ;;  %v2636_v57 = vadd.f32 %v2635_v17, %v2634_v51  ;;  %v2249_v5 = vrot.slane %v4656_v59, %v3439_v14  ;;  %v3319_v14 = vld [vmem:[%s4881_s2 + $0x108] sm:$0xff]  ;;  %v3321_v51 = vld [vmem:[%s4881_s2 + $0x100] sm:$0xff]  ;;  %v2739_v17 = vpop.f32.mrf.mxu0 }
 0x243   :  { %3151 = vmatprep.subr.mxu0 %v3289_v4  ;;  %3047 = vmatpush3.msra.mxu1 %v4961_v58  ;;  %v1924_v58 = vcombine.high %v1922_v24, %v1922_v24 }
 0x244   :  { %3152 = vmatpush3.msra.mxu0 %v4498_v61  ;;  %3048 = vmatprep.subr.mxu1 %v4932_v34  ;;  %v1057_v60 = vadd.f32 %v2636_v57, %v987_v56  ;;  %v2257_v61 = vcombine.high %v2249_v5, %v2249_v5  ;;  %v2091_v34 = vcombine.high %v4665_v0, %v4665_v0  ;;  %v2740_v55 = vpop.f32.mrf.mxu0 }
 0x245   :  { %3153 = vmatprep.subr.mxu0 %v4505_v62  ;;  %3049 = vmatpush3.msra.mxu1 %v4933_v27  ;;  %v4706_v27 = vld [vmem:[%s4881_s2 + $0x168] sm:$0xff]  ;;  %v4712_v62 = vld [vmem:[%s4884_s5] ss:$0 sm:$0xff]  ;;  %v2741_v22 = vadd.f32 %v2740_v55, %v2739_v17 }
 0x246   :  { %3154 = vmatpush3.msra.mxu0 %v4512_v63  ;;  %3050 = vmatprep.subr.mxu1 %v4091_v25  ;;  %3211 = vtanh.f32 %v1057_v60  ;;  %v4682_v25 = vld [vmem:[%s4881_s2 + $0x178] sm:$0xff]  ;;  %v4717_v63 = vld [vmem:[%s4881_s2 + $0x1e0] sm:$0xff] }
 0x247   :  { %3155 = vmatprep.subr.mxu0 %v4519_v1  ;;  %3051 = vmatpush3.msra.mxu1 %v4105_v30  ;;  %v4700_v30 = vld [vmem:[%s4881_s2 + $0x1e8] sm:$0xff]  ;;  %v1328_v57 = vadd.f32 %v2741_v22, %v4621_v18 }
 0x248   :  { %3156 = vmatpush3.msra.mxu0 %v4526_v3  ;;  %3052 = vmatprep.subr.mxu1 %v4112_v33  ;;  %v4694_v33 = vld [vmem:[%s4881_s2 + $0x170] sm:$0xff]  ;;  %v4729_v3 = vld [vmem:[%s4881_s2 + $0x1d8] sm:$0xff] }
 0x249   :  { %3157 = vmatprep.subr.mxu0 %v4533_v7  ;;  %3053 = vmatpush3.msra.mxu1 %v4119_v31  ;;  %v4688_v31 = vld [vmem:[%s4881_s2 + $0x1f0] sm:$0xff] }
 0x24a   :  { %2063 = vmatprep.mubr.f32.mxu1 %v1924_v58  ;;  %3158 = vmatpush3.msra.mxu0 %v4540_v11  ;;  %v4736_v11 = vld [vmem:[%s4881_s2 + $0x158] sm:$0xff]  ;;  %s3370_s2 = smov [#allocation5]  }
 0x24b   :  { %2327 = vmatprep.mubr.f32.mxu0 %v2257_v61  ;;  %2064 = vmatmul.mubr.f32.vlgmr.msra.gmra.mxu1 %v1922_v24  ;;  %s2486_s8 = sshll.u32 %s3370_s2, 4  ;;  %s2487_s8 = int_to_ptr.vmem [resolvable:$true] %s2486_s8 }
 0x24c   :  { %3092 = vmatprep.subr.mxu1 %v4432_v12  ;;  %2328 = vmatmul.mubr.f32.vlgmr.msra.gmra.mxu0 %v2249_v5  ;;  %s3342_s9 = scalar_lea.vmem %s2487_s8, 32  ;;  %p3347_p6 = scmp.lt.s32.totalorder %s2487_s8, %s2487_s8 }
 0x24d   :  { %3093 = vmatpush3.msra.mxu1 %v4682_v25  ;;  %2230 = vmatprep.mubr.f32.mxu1 %v2091_v34  ;;  %p3343_p5 = scmp.ne.s32.totalorder %s2487_s8, %s3342_s9  ;;  %p3348_p7 = scmp.lt.s32.totalorder %s3342_s9, %s3342_s9 }
 0x24e   :  { %3094 = vmatprep.subr.mxu1 %v4688_v31 }
 0x24f   :  { %3095 = vmatpush3.msra.mxu1 %v4694_v33  ;;  %p3349_p8 = por %p3348_p7, %p3347_p6 }
 0x250   :  { %3096 = vmatprep.subr.mxu1 %v4700_v30 }
 0x251   :  { %3097 = vmatpush3.msra.mxu1 %v4706_v27  ;;  %p3350_p9 = pnand %p3349_p8, %p3343_p5 }
 0x252   :  { %3098 = vmatprep.subr.mxu1 %v4717_v63 }
 0x253   :  { %v3212_v1 = vpop.eup %3211  ;;  %3099 = vmatpush3.msra.mxu1 %v4723_v2 }
 0x254   :  { %3100 = vmatprep.subr.mxu1 %v4729_v3  ;;  %v1067_v7 = vmul.f32 %v3212_v1, %v4712_v62 }
 0x255   :  { %3101 = vmatpush3.msra.mxu1 %v4736_v11 }
 0x256   :  { %3102 = vmatprep.subr.mxu1 %v4742_v13  ;;  %v1069_v15 = vsel %vm1068_vm0, %v1067_v7, 0.0 }
 0x257   :  { %3103 = vmatpush3.msra.mxu1 %v4749_v16  ;;  %1070 = vadd.xlane.f32.xlu0 %v1069_v15 }
 0x258   :  { %3104 = vmatprep.subr.mxu1 %v4755_v19 }
 0x259   :  { %3105 = vmatpush3.msra.mxu1 %v4761_v21 }
 0x25a   :  { %3106 = vmatprep.subr.mxu1 %v4767_v36 }
 0x25b   :  { %3107 = vmatpush3.msra.mxu1 %v4773_v37 }
 0x25c   :  { %3108 = vmatprep.subr.mxu1 %v4779_v38 }
 0x25d   :  { %3109 = vmatpush3.msra.mxu1 %v4785_v40 }
 0x25e   :  { %3110 = vmatprep.subr.mxu1 %v3308_v41 }
 0x25f   :  { %3111 = vmatpush3.msra.mxu1 %v3309_v42 }
 0x260   :  { %3112 = vmatprep.subr.mxu1 %v3310_v44 }
 0x261   :  { %3113 = vmatpush3.msra.mxu1 %v3311_v32  ;;  %v2704_v35 = vpop.f32.mrf.mxu1 }
 0x262   :  { %3114 = vmatprep.subr.mxu1 %v3312_v29  ;;  %v2809_v58 = vpop.f32.mrf.mxu0 }
 0x263   :  { %3115 = vmatpush3.msra.mxu1 %v3313_v10  ;;  %v2705_v6 = vpop.f32.mrf.mxu1 }
 0x264   :  { %3116 = vmatprep.subr.mxu1 %v3314_v8  ;;  %v2706_v46 = vadd.f32 %v2705_v6, %v2704_v35  ;;  %v2810_v61 = vpop.f32.mrf.mxu0 }
 0x265   :  { %3117 = vmatpush3.msra.mxu1 %v3315_v28  ;;  %v2811_v34 = vadd.f32 %v2810_v61, %v2809_v58 }
 0x266   :  { %3118 = vmatprep.subr.mxu1 %v3316_v50  ;;  %v1231_v48 = vadd.f32 %v2706_v46, %v1161_v45 }
 0x267   :  { %3119 = vmatpush3.msra.mxu1 %v3317_v9 }
 0x268   :  { %3120 = vmatprep.subr.mxu1 %v3318_v49  ;;  %3213 = vtanh.f32 %v1231_v48 }
 0x269   :  { %3121 = vmatpush3.msra.mxu1 %v3319_v14 }
 0x26a   :  { %3122 = vmatprep.subr.mxu1 %v3320_v26 }
 0x26b   :  { %3123 = vmatpush3.msra.mxu1 %v3321_v51 }
 0x26c   :  { %2231 = vmatmul.mubr.f32.vlgmr.msra.gmra.mxu1 %v4665_v0  ;;  %3162 = vmatprep.subr.mxu1 %v4432_v12 }
 0x26d   :  { %3163 = vmatpush3.msra.mxu1 %v4682_v25  ;;  %2397 = vmatprep.mubr.f32.mxu1 %v2258_v52 }
 0x26e   :  { %3164 = vmatprep.subr.mxu1 %v4688_v31 }
 0x26f   :  { %3165 = vmatpush3.msra.mxu1 %v4694_v33  ;;  %v1495_v33 = vadd.f32 %v2811_v34, %v4621_v18 }
 0x270   :  { %3166 = vmatprep.subr.mxu1 %v4700_v30 }
 0x271   :  { %3167 = vmatpush3.msra.mxu1 %v4706_v27 }
 0x272   :  { %3168 = vmatprep.subr.mxu1 %v4717_v63 }
 0x273   :  { %3169 = vmatpush3.msra.mxu1 %v4723_v2 }
 0x274   :  { %3170 = vmatprep.subr.mxu1 %v4729_v3 }
 0x275   :  { %v3214_v54 = vpop.eup %3213  ;;  %3171 = vmatpush3.msra.mxu1 %v4736_v11 }
 0x276   :  { %3172 = vmatprep.subr.mxu1 %v4742_v13  ;;  %v1235_v12 = vmul.f32 %v3214_v54, %v4712_v62 }
 0x277   :  { %3173 = vmatpush3.msra.mxu1 %v4749_v16 }
 0x278   :  { %3174 = vmatprep.subr.mxu1 %v4755_v19  ;;  %v1236_v53 = vsel %vm1068_vm0, %v1235_v12, 0.0 }
 0x279   :  { %3175 = vmatpush3.msra.mxu1 %v4761_v21  ;;  %1237 = vadd.xlane.f32.xlu0 %v1236_v53 }
 0x27a   :  { %3176 = vmatprep.subr.mxu1 %v4767_v36 }
 0x27b   :  { %3177 = vmatpush3.msra.mxu1 %v4773_v37 }
 0x27c   :  { %3178 = vmatprep.subr.mxu1 %v4779_v38 }
 0x27d   :  { %3179 = vmatpush3.msra.mxu1 %v4785_v40 }
 0x27e   :  { %3180 = vmatprep.subr.mxu1 %v3308_v41 }
 0x27f   :  { %3181 = vmatpush3.msra.mxu1 %v3309_v42 }
 0x280   :  { %3182 = vmatprep.subr.mxu1 %v3310_v44 }
 0x281   :  { %3183 = vmatpush3.msra.mxu1 %v3311_v32 }
 0x282   :  { %3184 = vmatprep.subr.mxu1 %v3312_v29 }
 0x283   :  { %3185 = vmatpush3.msra.mxu1 %v3313_v10  ;;  %v2774_v24 = vpop.f32.mrf.mxu1 }
 0x284   :  { %3186 = vmatprep.subr.mxu1 %v3314_v8  ;;  %v2879_v3 = vpop.f32.mrf.mxu0 }
 0x285   :  { %3187 = vmatpush3.msra.mxu1 %v3315_v28  ;;  %v2775_v56 = vpop.f32.mrf.mxu1 }
 0x286   :  { %3188 = vmatprep.subr.mxu1 %v3316_v50  ;;  %v2776_v4 = vadd.f32 %v2775_v56, %v2774_v24  ;;  %v2880_v7 = vpop.f32.mrf.mxu0 }
 0x287   :  { %3189 = vmatpush3.msra.mxu1 %v3317_v9  ;;  %v2881_v11 = vadd.f32 %v2880_v7, %v2879_v3 }
 0x288   :  { %3190 = vmatprep.subr.mxu1 %v3318_v49  ;;  %v1398_v59 = vadd.f32 %v2776_v4, %v1328_v57 }
 0x289   :  { %3191 = vmatpush3.msra.mxu1 %v3319_v14  ;;  %v1662_v16 = vadd.f32 %v2881_v11, %v4621_v18 }
 0x28a   :  { %3192 = vmatprep.subr.mxu1 %v3320_v26  ;;  %3215 = vtanh.f32 %v1398_v59 }
 0x28b   :  { %3193 = vmatpush3.msra.mxu1 %v3321_v51 }
 0x28c   :  { %2398 = vmatmul.mubr.f32.vlgmr.msra.gmra.mxu1 %v2256_v47 }
 0x297   :  { %v3216_v5 = vpop.eup %3215 }
 0x298   :  { %v1402_v60 = vmul.f32 %v3216_v5, %v4712_v62 }
 0x29a   :  { %v1403_v0 = vsel %vm1068_vm0, %v1402_v60, 0.0 }
 0x29b   :  { %1404 = vadd.xlane.f32.xlu1 %v1403_v0 }
 0x2a5   :  { %v2844_v25 = vpop.f32.mrf.mxu1 }
 0x2a6   :  { %v2949_v38 = vpop.f32.mrf.mxu0 }
 0x2a7   :  { %v2845_v31 = vpop.f32.mrf.mxu1 }
 0x2a8   :  { %v2846_v30 = vadd.f32 %v2845_v31, %v2844_v25  ;;  %v2950_v39 = vpop.f32.mrf.mxu0 }
 0x2a9   :  { %v2951_v40 = vadd.f32 %v2950_v39, %v2949_v38 }
 0x2aa   :  { %v1565_v27 = vadd.f32 %v2846_v30, %v1495_v33 }
 0x2ab   :  { %v1829_v43 = vadd.f32 %v2951_v40, %v4621_v18 }
 0x2ac   :  { %3217 = vtanh.f32 %v1565_v27 }
 0x2b9   :  { %v3218_v63 = vpop.eup %3217 }
 0x2ba   :  { %v1569_v1 = vmul.f32 %v3218_v63, %v4712_v62 }
 0x2bc   :  { %v1570_v2 = vsel %vm1068_vm0, %v1569_v1, 0.0 }
 0x2bd   :  { %1571 = vadd.xlane.f32.xlu1 %v1570_v2 }
 0x2c7   :  { %v2914_v13 = vpop.f32.mrf.mxu1 }
 0x2c8   :  { %v3019_v10 = vpop.f32.mrf.mxu0 }
 0x2c9   :  { %v2915_v15 = vpop.f32.mrf.mxu1 }
 0x2ca   :  { %v2916_v19 = vadd.f32 %v2915_v15, %v2914_v13  ;;  %v3020_v6 = vpop.f32.mrf.mxu0 }
 0x2cb   :  { %v3021_v45 = vadd.f32 %v3020_v6, %v3019_v10 }
 0x2cc   :  { %v1732_v20 = vadd.f32 %v2916_v19, %v1662_v16 }
 0x2cd   :  { %v1996_v28 = vadd.f32 %v3021_v45, %v4621_v18 }
 0x2ce   :  { %3219 = vtanh.f32 %v1732_v20 }
 0x2db   :  { %v3220_v21 = vpop.eup %3219 }
 0x2dc   :  { %v1736_v36 = vmul.f32 %v3220_v21, %v4712_v62 }
 0x2de   :  { %v1737_v37 = vsel %vm1068_vm0, %v1736_v36, 0.0 }
 0x2df   :  { %1738 = vadd.xlane.f32.xlu0 %v1737_v37 }
 0x2e0   :  { %v1071_v31 = vpop.xlane.xlu0 %1070 }
 0x2e9   :  { %v2984_v41 = vpop.f32.mrf.mxu1 }
 0x2ea   :  { %v3089_v14 = vpop.f32.mrf.mxu0 }
 0x2eb   :  { %v2985_v42 = vpop.f32.mrf.mxu1 }
 0x2ec   :  { %v2986_v44 = vadd.f32 %v2985_v42, %v2984_v41  ;;  %v3090_v52 = vpop.f32.mrf.mxu0 }
 0x2ed   :  { %v3091_v26 = vadd.f32 %v3090_v52, %v3089_v14 }
 0x2ee   :  { %v1899_v32 = vadd.f32 %v2986_v44, %v1829_v43 }
 0x2ef   :  { %v2163_v12 = vadd.f32 %v3091_v26, %v4621_v18 }
 0x2f0   :  { %3221 = vtanh.f32 %v1899_v32 }
 0x2fd   :  { %v3222_v35 = vpop.eup %3221 }
 0x2fe   :  { %v1903_v23 = vmul.f32 %v3222_v35, %v4712_v62 }
 0x300   :  { %v1904_v29 = vsel %vm1068_vm0, %v1903_v23, 0.0 }
 0x301   :  { %1905 = vadd.xlane.f32.xlu1 %v1904_v29 }
 0x302   :  { %v1238_v33 = vpop.xlane.xlu0 %1237 }
 0x303   :  { %v2408_v27 = vmax.f32 %v1071_v31, %v1238_v33 }
 0x30b   :  { %v3054_v8 = vpop.f32.mrf.mxu1 }
 0x30c   :  { %v3159_v56 = vpop.f32.mrf.mxu0 }
 0x30d   :  { %v3055_v46 = vpop.f32.mrf.mxu1 }
 0x30e   :  { %v3056_v47 = vadd.f32 %v3055_v46, %v3054_v8  ;;  %v3160_v57 = vpop.f32.mrf.mxu0 }
 0x30f   :  { %v3161_v4 = vadd.f32 %v3160_v57, %v3159_v56 }
 0x310   :  { %v2066_v50 = vadd.f32 %v3056_v47, %v1996_v28 }
 0x311   :  { %v2330_v60 = vadd.f32 %v3161_v4, %v4621_v18 }
 0x312   :  { %3223 = vtanh.f32 %v2066_v50 }
 0x31f   :  { %v3224_v48 = vpop.eup %3223 }
 0x320   :  { %v2070_v9 = vmul.f32 %v3224_v48, %v4712_v62 }
 0x322   :  { %v2071_v49 = vsel %vm1068_vm0, %v2070_v9, 0.0 }
 0x323   :  { %2072 = vadd.xlane.f32.xlu0 %v2071_v49 }
 0x324   :  { %v1405_v30 = vpop.xlane.xlu1 %1404 }
 0x325   :  { %v2409_v1 = vmax.f32 %v2408_v27, %v1405_v30 }
 0x32c   :  { %v3124_v51 = vpop.f32.mrf.mxu1 }
 0x32e   :  { %v3125_v54 = vpop.f32.mrf.mxu1 }
 0x32f   :  { %v3126_v53 = vadd.f32 %v3125_v54, %v3124_v51 }
 0x331   :  { %v2233_v17 = vadd.f32 %v3126_v53, %v2163_v12 }
 0x333   :  { %3225 = vtanh.f32 %v2233_v17 }
 0x340   :  { %v3226_v55 = vpop.eup %3225 }
 0x341   :  { %v2237_v22 = vmul.f32 %v3226_v55, %v4712_v62 }
 0x343   :  { %v2238_v24 = vsel %vm1068_vm0, %v2237_v22, 0.0 }
 0x344   :  { %2239 = vadd.xlane.f32.xlu1 %v2238_v24 }
 0x346   :  { %v1572_v63 = vpop.xlane.xlu1 %1571 }
 0x347   :  { %v2410_v3 = vmax.f32 %v2409_v1, %v1572_v63 }
 0x34c   :  { %v3194_v59 = vpop.f32.mrf.mxu1 }
 0x34e   :  { %v3195_v5 = vpop.f32.mrf.mxu1 }
 0x34f   :  { %v3196_v0 = vadd.f32 %v3195_v5, %v3194_v59 }
 0x351   :  { %v2400_v58 = vadd.f32 %v3196_v0, %v2330_v60 }
 0x353   :  { %3227 = vtanh.f32 %v2400_v58 }
 0x360   :  { %v3228_v61 = vpop.eup %3227 }
 0x361   :  { %v2404_v34 = vmul.f32 %v3228_v61, %v4712_v62 }
 0x363   :  { %v2405_v25 = vsel %vm1068_vm0, %v2404_v34, 0.0 }
 0x364   :  { %2406 = vadd.xlane.f32.xlu0 %v2405_v25 }
 0x368   :  { %v1739_v2 = vpop.xlane.xlu0 %1738 }
 0x369   :  { %v2411_v11 = vmax.f32 %v2410_v3, %v1739_v2 }
 0x38a   :  { %v1906_v7 = vpop.xlane.xlu1 %1905 }
 0x38b   :  { %v2412_v13 = vmax.f32 %v2411_v11, %v1906_v7 }
 0x3ac   :  { %v2073_v18 = vpop.xlane.xlu0 %2072 }
 0x3ad   :  { %v2413_v16 = vmax.f32 %v2412_v13, %v2073_v18 }
 0x3cd   :  { %v2240_v15 = vpop.xlane.xlu1 %2239 }
 0x3ce   :  { %v2414_v19 = vmax.f32 %v2413_v16, %v2240_v15 }
 0x3ed   :  { %v2407_v20 = vpop.xlane.xlu0 %2406 }
 0x3ee   :  { %v2415_v62 = vmax.f32 %v2414_v19, %v2407_v20 }
 0x3f0   :  { %v2416_v21 = vsub.f32 %v1071_v31, %v2415_v62  ;;  %v2419_v36 = vsub.f32 %v1238_v33, %v2415_v62  ;;  %v2422_v37 = vsub.f32 %v1405_v30, %v2415_v62  ;;  %v2425_v38 = vsub.f32 %v1572_v63, %v2415_v62 }
 0x3f1   :  { %v2428_v42 = vsub.f32 %v1739_v2, %v2415_v62  ;;  %v2431_v44 = vsub.f32 %v1906_v7, %v2415_v62  ;;  %v2434_v35 = vsub.f32 %v2073_v18, %v2415_v62  ;;  %v2437_v29 = vsub.f32 %v2240_v15, %v2415_v62 }
 0x3f2   :  { %v2417_v39 = vmul.f32 1.442695, %v2416_v21  ;;  %v2420_v40 = vmul.f32 1.442695, %v2419_v36  ;;  %v2423_v41 = vmul.f32 1.442695, %v2422_v37  ;;  %v2440_v6 = vsub.f32 %v2407_v20, %v2415_v62 }
 0x3f3   :  { %v2426_v43 = vmul.f32 1.442695, %v2425_v38  ;;  %v2429_v32 = vmul.f32 1.442695, %v2428_v42  ;;  %v2432_v23 = vmul.f32 1.442695, %v2431_v44 }
 0x3f4   :  { %3229 = vpow2.f32 %v2417_v39  ;;  %v2435_v10 = vmul.f32 1.442695, %v2434_v35  ;;  %v2438_v45 = vmul.f32 1.442695, %v2437_v29  ;;  %v2441_v8 = vmul.f32 1.442695, %v2440_v6 }
 0x3f5   :  { %3231 = vpow2.f32 %v2420_v40 }
 0x3f6   :  { %3233 = vpow2.f32 %v2423_v41 }
 0x3f7   :  { %3235 = vpow2.f32 %v2426_v43 }
 0x3f8   :  { %3237 = vpow2.f32 %v2429_v32 }
 0x3f9   :  { %3239 = vpow2.f32 %v2432_v23 }
 0x3fa   :  { %3241 = vpow2.f32 %v2435_v10 }
 0x3fb   :  { %3243 = vpow2.f32 %v2438_v45 }
 0x3fc   :  { %3245 = vpow2.f32 %v2441_v8 }
 0x401   :  { %v3230_v46 = vpop.eup %3229 }
 0x402   :  { %v3232_v28 = vpop.eup %3231 }
 0x403   :  { %v2443_v47 = vadd.f32 %v3232_v28, %v3230_v46  ;;  %v3234_v50 = vpop.eup %3233 }
 0x404   :  { %v3236_v9 = vpop.eup %3235 }
 0x405   :  { %v2444_v48 = vadd.f32 %v3234_v50, %v2443_v47  ;;  %v3238_v14 = vpop.eup %3237 }
 0x406   :  { %v3240_v26 = vpop.eup %3239 }
 0x407   :  { %v2445_v49 = vadd.f32 %v3236_v9, %v2444_v48  ;;  %v3242_v54 = vpop.eup %3241 }
 0x408   :  { %v3244_v53 = vpop.eup %3243 }
 0x409   :  { %v2446_v52 = vadd.f32 %v3238_v14, %v2445_v49  ;;  %v3246_v55 = vpop.eup %3245 }
 0x40b   :  { %v2447_v51 = vadd.f32 %v3240_v26, %v2446_v52 }
 0x40d   :  { %v2448_v12 = vadd.f32 %v3242_v54, %v2447_v51 }
 0x40f   :  { %v2449_v17 = vadd.f32 %v3244_v53, %v2448_v12 }
 0x411   :  { %v2450_v22 = vadd.f32 %v3246_v55, %v2449_v17 }
 0x413   :  { %3247 = vrcp.f32 %v2450_v22 }
 0x420   :  { %v3248_v24 = vpop.eup %3247 }
 0x421   :  { %v2453_v56 = vmul.f32 %v3248_v24, %v3230_v46  ;;  %v2456_v57 = vmul.f32 %v3248_v24, %v3232_v28  ;;  %v2459_v4 = vmul.f32 %v3248_v24, %v3234_v50  ;;  %v2462_v59 = vmul.f32 %v3248_v24, %v3236_v9 }
 0x422   :  { %v2465_v5 = vmul.f32 %v3248_v24, %v3238_v14  ;;  %v2468_v60 = vmul.f32 %v3248_v24, %v3240_v26  ;;  %v2471_v0 = vmul.f32 %v3248_v24, %v3242_v54  ;;  %v2474_v58 = vmul.f32 %v3248_v24, %v3244_v53 }
 0x423   :  { %2455 = vst.msk [vmem:[#allocation5] sm:$0x3] %vm2454_vm1, %v2453_v56  ;;  %v2477_v61 = vmul.f32 %v3248_v24, %v3246_v55 }
 0x424   :  { %2458 = vst.msk [vmem:[#allocation5] sm:$0x3] %vm2457_vm2, %v2456_v57 }
 0x425   :  { %2461 = vst.msk [vmem:[#allocation5] sm:$0x3] %vm2460_vm3, %v2459_v4 }
 0x426   :  { %2464 = vst.msk [vmem:[#allocation5] sm:$0x3] %vm2463_vm4, %v2462_v59 }
 0x427   :  { %2467 = vst.msk [vmem:[#allocation5] sm:$0x3] %vm2466_vm5, %v2465_v5 }
 0x428   :  { %2470 = vst.msk [vmem:[#allocation5] sm:$0x3] %vm2469_vm6, %v2468_v60 }
 0x429   :  { %2473 = vst.msk [vmem:[#allocation5] sm:$0x3] %vm2472_vm7, %v2471_v0 }
 0x42a   :  { %2476 = vst.msk [vmem:[#allocation5] sm:$0x3] %vm2475_vm8, %v2474_v58 }
 0x42b   :  { %2479 = vst.msk [vmem:[#allocation5] sm:$0x3] %vm2478_vm9, %v2477_v61 }
 0x42c   :  { %3353 = shalt.err (!%p3350_p9)
}
 0x42d   :  { %2489 = dma.vmem_to_hbm [thread:$0]  %s2487_s8, 32, %s4885_s6, [#allocation4]  }
 0x42e   :  { %3364 = dma.done.wait [#allocation4], 32  }
 0x42f   :  { %3365 = vsyncadd [#allocation4], 4294967264 }
 0x430   :  { %2493 = vsyncpa [#allocation3], 1 }
 0x431   :  { %2494 = vsyncpa [#allocation4], 1 }

</bundles_post_ra>
